<compile_context>
chip_gen: v7x
topology: tpu7x:2x2x1
jax: 0.10.0
libtpu: 0.0.40
codegen_flags: <defaults>
</compile_context>

<pallas_src>
import functools
import math

import jax
import jax.numpy as jnp
from jax.experimental import pallas as pl
from jax.experimental.pallas import tpu as pltpu


def _mha_kernel(q_ref, k_ref, v_ref,
                wq_ref, bq_ref, wk_ref, bk_ref, wv_ref, bv_ref,
                wo_ref, bo_ref,
                o_ref,
                kh_scratch, vh_scratch,
                *, num_heads, d_k, kv_tile):
    f32 = jnp.float32
    bf16 = jnp.bfloat16

    tq, d_model = q_ref.shape          # query-tile rows, model dim
    sk = k_ref.shape[0]                # key/value rows (full sequence)
    h = num_heads
    n_kv = sk // kv_tile               # compile-time constant
    qi = pl.program_id(1)

    # --- K/V projection + head split: computed ONCE per batch element ------
    # qi is the inner "arbitrary" grid axis; scratch persists across qi steps,
    # so query tiles > 0 reuse the cached projections (no redundant GEMMs).
    @pl.when(qi == 0)
    def _():
        k_proj = jnp.dot(k_ref[...], wk_ref[...],
                         preferred_element_type=f32) + bk_ref[...]
        v_proj = jnp.dot(v_ref[...], wv_ref[...],
                         preferred_element_type=f32) + bv_ref[...]
        kh_scratch[...] = pltpu.einshape(
            "khd->hkd", k_proj.reshape(sk, h, d_k)).astype(bf16)
        vh_scratch[...] = pltpu.einshape(
            "khd->hkd", v_proj.reshape(sk, h, d_k)).astype(bf16)

    # --- Q projection for this query tile; fold 1/sqrt(d_k) in while f32 ---
    q_proj = jnp.dot(q_ref[...], wq_ref[...],
                     preferred_element_type=f32) + bq_ref[...]
    q_proj = q_proj * (1.0 / math.sqrt(d_k))
    qh = pltpu.einshape("qhd->hqd", q_proj.reshape(tq, h, d_k)).astype(bf16)

    # --- flash-style online softmax over KV tiles of the cached scratch ----
    # n_kv is static, so this unrolls with static slices; only one
    # (H, TQ, kv_tile) f32 score tile is live at a time.
    m_i = jnp.full((h, tq, 1), -jnp.inf, f32)
    l_i = jnp.zeros((h, tq, 1), f32)
    acc = jnp.zeros((h, tq, d_k), f32)
    for kv in range(n_kv):
        lo = kv * kv_tile
        kh_t = kh_scratch[:, lo:lo + kv_tile, :]
        vh_t = vh_scratch[:, lo:lo + kv_tile, :]
        s = jnp.einsum("hqd,hkd->hqk", qh, kh_t,
                       preferred_element_type=f32)            # (H, TQ, TKV)
        m_new = jnp.maximum(m_i, jnp.max(s, axis=-1, keepdims=True))
        alpha = jnp.exp(m_i - m_new)
        p = jnp.exp(s - m_new)
        l_i = alpha * l_i + jnp.sum(p, axis=-1, keepdims=True)
        acc = alpha * acc + jnp.einsum("hqk,hkd->hqd", p.astype(bf16), vh_t,
                                       preferred_element_type=f32)
        m_i = m_new

    # EUP reciprocal (approx) keeps the normalization off the VALU; ~1e-3
    # relative error, well inside the bf16 tolerance of this kernel.
    attn = acc * pl.reciprocal(l_i, approx=True)               # (H, TQ, d_k)

    # --- merge heads back to (TQ, D) and apply the output projection -------
    concat = pltpu.einshape("hqd->qhd", attn).reshape(tq, d_model)
    out = jnp.dot(concat.astype(bf16), wo_ref[...],
                  preferred_element_type=f32) + bo_ref[...]
    o_ref[...] = out.astype(o_ref.dtype)


def prepare_params(params):
    """One-time weight preprocessing, hoisted out of the per-call path.

    Transposes PyTorch-convention (out, in) weights to (in, out) and casts to
    bf16 (MXU operand dtype); biases stay f32 (added after f32 accumulation).
    Call once per model, not per forward.
    """
    prep = {}
    for n in ("q", "k", "v", "o"):
        prep["w" + n] = jnp.asarray(params["w" + n]).T.astype(jnp.bfloat16)
        prep["b" + n] = jnp.asarray(params["b" + n]).reshape(1, -1).astype(jnp.float32)
    return prep


def _pick_tile(size, preferred):
    for cand in preferred:
        if size >= cand and size % cand == 0:
            return cand
    return size  # small / ragged sizes fall back to a single full-extent tile


def multi_head_attention(q, k, v, prepped, num_heads, q_tile=None, kv_tile=None):
    """q, k, v: (B, S, D) float32. `prepped`: output of prepare_params()."""
    B, Sq, D = q.shape
    Sk = k.shape[1]
    Sv = v.shape[1]
    assert Sk == Sv, "key/value sequence lengths must match"
    assert D % num_heads == 0
    d_k = D // num_heads
    out_dtype = q.dtype

    # TQ=256 fills the 256-wide MXU M-dim on v6e/v7x; 128 is enough on v5e
    # (pass q_tile=128 there).  Ragged Sq falls back to one full-extent tile.
    TQ = q_tile if q_tile is not None else _pick_tile(Sq, (256, 128))
    TKV = kv_tile if kv_tile is not None else _pick_tile(Sk, (512, 256, 128))
    assert Sq % TQ == 0 and Sk % TKV == 0
    n_q_tiles = Sq // TQ

    bf16, f32 = jnp.bfloat16, jnp.float32
    qb, kb, vb = q.astype(bf16), k.astype(bf16), v.astype(bf16)

    # Constant-index weight/bias blocks: single-buffered (their block never
    # changes, double-buffering them only burns VMEM).
    def w_spec():
        return pl.BlockSpec((D, D), lambda b, qi: (0, 0),
                            pipeline_mode=pl.Buffered(1))

    def b_spec():
        return pl.BlockSpec((1, D), lambda b, qi: (0, 0),
                            pipeline_mode=pl.Buffered(1))

    # Full-sequence K/V blocks change only with b, so Pallas DMAs them once
    # per batch element (re-fetch skipped while the block index is unchanged).
    # TODO(synk): for very long Sk on v7x (64 MiB VMEM), stream K/V as KV-tile
    # blocks instead of full-sequence blocks.
    def kv_in_spec():
        return pl.BlockSpec((None, Sk, D), lambda b, qi: (b, 0, 0))

    kernel = functools.partial(_mha_kernel, num_heads=num_heads, d_k=d_k,
                               kv_tile=TKV)

    # Rough VMEM budget -> explicit scoped limit (the 16/32 MiB defaults are
    # the first thing that rejects production shapes).
    vmem_needed = (
        2 * TQ * D * 2                              # q tile (x2 buf, bf16)
        + 2 * 2 * Sk * D * 2                        # k/v blocks (x2 buf, bf16)
        + 4 * D * D * 2                             # weights (x1 buf, bf16)
        + 4 * 8 * max(D, 128) * 4                   # biases (padded, f32)
        + 2 * TQ * D * 4                            # out tile (x2 buf, f32)
        + 2 * num_heads * Sk * d_k * 2              # cached K/V head scratch
        + 4 * num_heads * TQ * max(TKV, 128) * 4    # live score/prob tiles
    )
    vmem_limit = max(32 * 1024 * 1024, int(vmem_needed * 3 // 2))

    flops = (2 * B * (Sq + Sk + Sv) * D * D         # Q/K/V projections
             + 2 * B * Sq * D * D                   # output projection
             + 4 * B * Sq * Sk * D)                 # QK^T and PV
    transcendentals = B * num_heads * Sq * Sk       # softmax exps
    bytes_accessed = (B * (Sq + Sk + Sv) * D * 2    # bf16 activations in
                      + 4 * D * D * 2 + 4 * D * 4   # weights + biases
                      + B * Sq * D * 4)             # f32 output

    return pl.pallas_call(
        kernel,
        out_shape=jax.ShapeDtypeStruct((B, Sq, D), out_dtype),
        grid_spec=pltpu.PrefetchScalarGridSpec(
            num_scalar_prefetch=0,
            grid=(B, n_q_tiles),
            in_specs=[
                pl.BlockSpec((None, TQ, D), lambda b, qi: (b, qi, 0)),  # q tile
                kv_in_spec(),     # k full sequence (per batch element)
                kv_in_spec(),     # v full sequence (per batch element)
                w_spec(), b_spec(),   # Wq, bq
                w_spec(), b_spec(),   # Wk, bk
                w_spec(), b_spec(),   # Wv, bv
                w_spec(), b_spec(),   # Wo, bo
            ],
            out_specs=pl.BlockSpec((None, TQ, D), lambda b, qi: (b, qi, 0)),
            scratch_shapes=[
                pltpu.VMEM((num_heads, Sk, d_k), bf16),   # cached K heads
                pltpu.VMEM((num_heads, Sk, d_k), bf16),   # cached V heads
            ],
        ),
        compiler_params=pltpu.CompilerParams(
            # batch parallel (megacore on v7x); qi arbitrary because query
            # tiles reuse the K/V-projection scratch filled at qi == 0.
            dimension_semantics=("parallel", "arbitrary"),
            vmem_limit_bytes=vmem_limit,
        ),
        cost_estimate=pl.CostEstimate(
            flops=flops,
            transcendentals=transcendentals,
            bytes_accessed=bytes_accessed,
        ),
    )(qb, kb, vb,
      prepped["wq"], prepped["bq"], prepped["wk"], prepped["bk"],
      prepped["wv"], prepped["bv"], prepped["wo"], prepped["bo"])


def _reference(q, k, v, params, num_heads):
    """Pure-JAX f32 reference matching the PyTorch forward (mask=None)."""
    B, Sq, D = q.shape
    d_k = D // num_heads

    def lin(x, w, b):
        return jnp.einsum("bsd,od->bso", x, w) + b

    qp = lin(q, params["wq"], params["bq"]).reshape(B, Sq, num_heads, d_k).transpose(0, 2, 1, 3)
    kp = lin(k, params["wk"], params["bk"]).reshape(B, k.shape[1], num_heads, d_k).transpose(0, 2, 1, 3)
    vp = lin(v, params["wv"], params["bv"]).reshape(B, v.shape[1], num_heads, d_k).transpose(0, 2, 1, 3)

    scores = jnp.einsum("bhqd,bhkd->bhqk", qp, kp) / math.sqrt(d_k)
    probs = jax.nn.softmax(scores, axis=-1)
    attn = jnp.einsum("bhqk,bhkd->bhqd", probs, vp)
    attn = attn.transpose(0, 2, 1, 3).reshape(B, Sq, D)
    return jnp.einsum("bsd,od->bso", attn, params["wo"]) + params["bo"]


def _init_params(key, d_model):
    """Deterministic init mimicking nn.Linear default (uniform(-1/sqrt(in), 1/sqrt(in)))."""
    bound = 1.0 / math.sqrt(d_model)
    keys = jax.random.split(key, 8)
    u = lambda kk, shape: jax.random.uniform(kk, shape, jnp.float32, -bound, bound)
    return {
        "wq": u(keys[0], (d_model, d_model)), "bq": u(keys[1], (d_model,)),
        "wk": u(keys[2], (d_model, d_model)), "bk": u(keys[3], (d_model,)),
        "wv": u(keys[4], (d_model, d_model)), "bv": u(keys[5], (d_model,)),
        "wo": u(keys[6], (d_model, d_model)), "bo": u(keys[7], (d_model,)),
    }


if __name__ == "__main__":
    # Small shapes consistent with the module's forward: (B, S, d_model)
    B, S, d_model, num_heads = 2, 8, 32, 4

    key = jax.random.PRNGKey(0)
    kq, kk, kv, kp = jax.random.split(key, 4)
    q = jax.random.normal(kq, (B, S, d_model), jnp.float32)
    k = jax.random.normal(kk, (B, S, d_model), jnp.float32)
    v = jax.random.normal(kv, (B, S, d_model), jnp.float32)
    params = _init_params(kp, d_model)

    # TODO(synk): the optional `mask` argument of the PyTorch forward is not
    # implemented (mask=None path only); dropout_perc is unused by the module.
    prepped = prepare_params(params)            # one-time weight prep (hoisted)
    out = multi_head_attention(q, k, v, prepped, num_heads)
    out = jax.block_until_ready(out)

    ref = _reference(q, k, v, params, num_heads)
    assert out.shape == (B, S, d_model)
    # bf16 MXU operands with f32 accumulation + approx reciprocal: compare at
    # a bf16-appropriate tolerance against the pure-f32 reference.
    assert jnp.allclose(out, ref, rtol=2e-2, atol=3e-2), "mismatch vs reference"

    print("KERNEL_OK")
</pallas_src>

<mosaic_0001>
module attributes {stable_mosaic.version = 11 : i64} {
  func.func @_mha_kernel(%arg0: i32, %arg1: i32, %arg2: memref<1x8x32xbf16, #tpu.memory_space<vmem>>, %arg3: memref<1x8x32xbf16, #tpu.memory_space<vmem>>, %arg4: memref<1x8x32xbf16, #tpu.memory_space<vmem>>, %arg5: memref<32x32xbf16, #tpu.memory_space<vmem>>, %arg6: memref<1x32xf32, #tpu.memory_space<vmem>>, %arg7: memref<32x32xbf16, #tpu.memory_space<vmem>>, %arg8: memref<1x32xf32, #tpu.memory_space<vmem>>, %arg9: memref<32x32xbf16, #tpu.memory_space<vmem>>, %arg10: memref<1x32xf32, #tpu.memory_space<vmem>>, %arg11: memref<32x32xbf16, #tpu.memory_space<vmem>>, %arg12: memref<1x32xf32, #tpu.memory_space<vmem>>, %arg13: memref<1x8x32xf32, #tpu.memory_space<vmem>>, %arg14: memref<4x8x8xbf16, #tpu.memory_space<vmem>>, %arg15: memref<4x8x8xbf16, #tpu.memory_space<vmem>>) attributes {dimension_semantics = [#tpu.dimension_semantics<parallel>, #tpu.dimension_semantics<arbitrary>], iteration_bounds = array<i64: 2, 1>, scalar_prefetch = 0 : i64, scratch_operands = 2 : i64, tpu.core_type = #tpu.core_type<tc>, window_params = [{transform_indices = @transform_0, window_bounds = array<i64: 1, 8, 32>}, {transform_indices = @transform_1, window_bounds = array<i64: 1, 8, 32>}, {transform_indices = @transform_2, window_bounds = array<i64: 1, 8, 32>}, {pipeline_mode = #tpu.pipeline_mode<synchronous>, transform_indices = @transform_3, window_bounds = array<i64: 32, 32>}, {pipeline_mode = #tpu.pipeline_mode<synchronous>, transform_indices = @transform_4, window_bounds = array<i64: 1, 32>}, {pipeline_mode = #tpu.pipeline_mode<synchronous>, transform_indices = @transform_5, window_bounds = array<i64: 32, 32>}, {pipeline_mode = #tpu.pipeline_mode<synchronous>, transform_indices = @transform_6, window_bounds = array<i64: 1, 32>}, {pipeline_mode = #tpu.pipeline_mode<synchronous>, transform_indices = @transform_7, window_bounds = array<i64: 32, 32>}, {pipeline_mode = #tpu.pipeline_mode<synchronous>, transform_indices = @transform_8, window_bounds = array<i64: 1, 32>}, {pipeline_mode = #tpu.pipeline_mode<synchronous>, transform_indices = @transform_9, window_bounds = array<i64: 32, 32>}, {pipeline_mode = #tpu.pipeline_mode<synchronous>, transform_indices = @transform_10, window_bounds = array<i64: 1, 32>}, {transform_indices = @transform_11, window_bounds = array<i64: 1, 8, 32>}]} {
    %c0_i32 = arith.constant 0 : i32
    %0 = arith.cmpi eq, %arg1, %c0_i32 : i32
    %1 = arith.extui %0 : i1 to i32
    %c0_i32_0 = arith.constant 0 : i32
    %2 = arith.cmpi ne, %1, %c0_i32_0 : i32
    scf.if %2 {
      %c0_29 = arith.constant 0 : index
      %c0_30 = arith.constant 0 : index
      %c0_31 = arith.constant 0 : index
      %52 = vector.load %arg3[%c0_29, %c0_30, %c0_31] : memref<1x8x32xbf16, #tpu.memory_space<vmem>>, vector<1x8x32xbf16>
      %53 = vector.shape_cast %52 : vector<1x8x32xbf16> to vector<8x32xbf16>
      %c0_32 = arith.constant 0 : index
      %c0_33 = arith.constant 0 : index
      %54 = vector.load %arg7[%c0_32, %c0_33] : memref<32x32xbf16, #tpu.memory_space<vmem>>, vector<32x32xbf16>
      %cst_34 = arith.constant dense<0.000000e+00> : vector<8x32xf32>
      %55 = tpu.matmul %53, %54, %cst_34 {dimension_numbers = #tpu.dot_dimension_numbers<[1], [0], [0], [1], [0, 0, 1, 1], [], []>} : vector<8x32xbf16>, vector<32x32xbf16>, vector<8x32xf32> -> vector<8x32xf32>
      %c0_35 = arith.constant 0 : index
      %c0_36 = arith.constant 0 : index
      %56 = vector.load %arg8[%c0_35, %c0_36] : memref<1x32xf32, #tpu.memory_space<vmem>>, vector<1x32xf32>
      %57 = vector.broadcast %56 : vector<1x32xf32> to vector<8x32xf32>
      %58 = arith.addf %55, %57 : vector<8x32xf32>
      %c0_37 = arith.constant 0 : index
      %c0_38 = arith.constant 0 : index
      %c0_39 = arith.constant 0 : index
      %59 = vector.load %arg4[%c0_37, %c0_38, %c0_39] : memref<1x8x32xbf16, #tpu.memory_space<vmem>>, vector<1x8x32xbf16>
      %60 = vector.shape_cast %59 : vector<1x8x32xbf16> to vector<8x32xbf16>
      %c0_40 = arith.constant 0 : index
      %c0_41 = arith.constant 0 : index
      %61 = vector.load %arg9[%c0_40, %c0_41] : memref<32x32xbf16, #tpu.memory_space<vmem>>, vector<32x32xbf16>
      %cst_42 = arith.constant dense<0.000000e+00> : vector<8x32xf32>
      %62 = tpu.matmul %60, %61, %cst_42 {dimension_numbers = #tpu.dot_dimension_numbers<[1], [0], [0], [1], [0, 0, 1, 1], [], []>} : vector<8x32xbf16>, vector<32x32xbf16>, vector<8x32xf32> -> vector<8x32xf32>
      %c0_43 = arith.constant 0 : index
      %c0_44 = arith.constant 0 : index
      %63 = vector.load %arg10[%c0_43, %c0_44] : memref<1x32xf32, #tpu.memory_space<vmem>>, vector<1x32xf32>
      %64 = vector.broadcast %63 : vector<1x32xf32> to vector<8x32xf32>
      %65 = arith.addf %62, %64 : vector<8x32xf32>
      %66 = vector.shape_cast %58 : vector<8x32xf32> to vector<8x4x8xf32>
      %67 = tpu.transpose %66, [1, 0, 2] : vector<8x4x8xf32> -> vector<4x8x8xf32>
      %68 = arith.truncf %67 : vector<4x8x8xf32> to vector<4x8x8xbf16>
      %c0_45 = arith.constant 0 : index
      %c0_46 = arith.constant 0 : index
      %c0_47 = arith.constant 0 : index
      %69 = vector.load %arg14[%c0_45, %c0_46, %c0_47] : memref<4x8x8xbf16, #tpu.memory_space<vmem>>, vector<4x8x8xbf16>
      tpu.vector_store %arg14[%c0_45, %c0_46, %c0_47], %68 {strides = array<i32>} : memref<4x8x8xbf16, #tpu.memory_space<vmem>>, vector<4x8x8xbf16>,
      %70 = vector.shape_cast %65 : vector<8x32xf32> to vector<8x4x8xf32>
      %71 = tpu.transpose %70, [1, 0, 2] : vector<8x4x8xf32> -> vector<4x8x8xf32>
      %72 = arith.truncf %71 : vector<4x8x8xf32> to vector<4x8x8xbf16>
      %c0_48 = arith.constant 0 : index
      %c0_49 = arith.constant 0 : index
      %c0_50 = arith.constant 0 : index
      %73 = vector.load %arg15[%c0_48, %c0_49, %c0_50] : memref<4x8x8xbf16, #tpu.memory_space<vmem>>, vector<4x8x8xbf16>
      tpu.vector_store %arg15[%c0_48, %c0_49, %c0_50], %72 {strides = array<i32>} : memref<4x8x8xbf16, #tpu.memory_space<vmem>>, vector<4x8x8xbf16>,
    } else {
    }
    %c0 = arith.constant 0 : index
    %c0_1 = arith.constant 0 : index
    %c0_2 = arith.constant 0 : index
    %3 = vector.load %arg2[%c0, %c0_1, %c0_2] : memref<1x8x32xbf16, #tpu.memory_space<vmem>>, vector<1x8x32xbf16>
    %4 = vector.shape_cast %3 : vector<1x8x32xbf16> to vector<8x32xbf16>
    %c0_3 = arith.constant 0 : index
    %c0_4 = arith.constant 0 : index
    %5 = vector.load %arg5[%c0_3, %c0_4] : memref<32x32xbf16, #tpu.memory_space<vmem>>, vector<32x32xbf16>
    %cst = arith.constant dense<0.000000e+00> : vector<8x32xf32>
    %6 = tpu.matmul %4, %5, %cst {dimension_numbers = #tpu.dot_dimension_numbers<[1], [0], [0], [1], [0, 0, 1, 1], [], []>} : vector<8x32xbf16>, vector<32x32xbf16>, vector<8x32xf32> -> vector<8x32xf32>
    %c0_5 = arith.constant 0 : index
    %c0_6 = arith.constant 0 : index
    %7 = vector.load %arg6[%c0_5, %c0_6] : memref<1x32xf32, #tpu.memory_space<vmem>>, vector<1x32xf32>
    %8 = vector.broadcast %7 : vector<1x32xf32> to vector<8x32xf32>
    %9 = arith.addf %6, %8 : vector<8x32xf32>
    %cst_7 = arith.constant 0.353553385 : f32
    %10 = vector.broadcast %cst_7 : f32 to vector<8x32xf32>
    %11 = arith.mulf %9, %10 : vector<8x32xf32>
    %12 = vector.shape_cast %11 : vector<8x32xf32> to vector<8x4x8xf32>
    %13 = tpu.transpose %12, [1, 0, 2] : vector<8x4x8xf32> -> vector<4x8x8xf32>
    %14 = arith.truncf %13 : vector<4x8x8xf32> to vector<4x8x8xbf16>
    %cst_8 = arith.constant 0xFF800000 : f32
    %15 = vector.broadcast %cst_8 : f32 to vector<4x8x1xf32>
    %cst_9 = arith.constant 0.000000e+00 : f32
    %16 = vector.broadcast %cst_9 : f32 to vector<4x8x1xf32>
    %cst_10 = arith.constant 0.000000e+00 : f32
    %17 = vector.broadcast %cst_10 : f32 to vector<4x8x8xf32>
    %c0_11 = arith.constant 0 : index
    %c0_12 = arith.constant 0 : index
    %c0_13 = arith.constant 0 : index
    %18 = vector.load %arg14[%c0_11, %c0_12, %c0_13] : memref<4x8x8xbf16, #tpu.memory_space<vmem>>, vector<4x8x8xbf16>
    %c0_14 = arith.constant 0 : index
    %c0_15 = arith.constant 0 : index
    %c0_16 = arith.constant 0 : index
    %19 = vector.load %arg15[%c0_14, %c0_15, %c0_16] : memref<4x8x8xbf16, #tpu.memory_space<vmem>>, vector<4x8x8xbf16>
    "tpu.trace_start"() <{level = 10 : i32, message = "hqd,hkd->hqk"}> : () -> ()
    %cst_17 = arith.constant dense<0.000000e+00> : vector<4x8x8xf32>
    %20 = tpu.matmul %14, %18, %cst_17 {dimension_numbers = #tpu.dot_dimension_numbers<[2], [2], [1], [1], [0, 0, 0, 1, 1, 1], [0], [0]>} : vector<4x8x8xbf16>, vector<4x8x8xbf16>, vector<4x8x8xf32> -> vector<4x8x8xf32>
    "tpu.trace_stop"() : () -> ()
    %cst_18 = arith.constant dense<0xFF800000> : vector<4x8xf32>
    %21 = vector.multi_reduction <maximumf>, %20, %cst_18 [2] : vector<4x8x8xf32> to vector<4x8xf32>
    %22 = vector.shape_cast %21 : vector<4x8xf32> to vector<4x8x1xf32>
    %23 = arith.maximumf %15, %22 : vector<4x8x1xf32>
    %24 = arith.subf %15, %23 : vector<4x8x1xf32>
    %25 = math.exp %24 : vector<4x8x1xf32>
    %26 = vector.broadcast %23 : vector<4x8x1xf32> to vector<4x8x8xf32>
    %27 = arith.subf %20, %26 : vector<4x8x8xf32>
    %28 = math.exp %27 : vector<4x8x8xf32>
    %29 = arith.mulf %25, %16 : vector<4x8x1xf32>
    %cst_19 = arith.constant dense<0.000000e+00> : vector<4x8xf32>
    %30 = vector.multi_reduction <add>, %28, %cst_19 [2] : vector<4x8x8xf32> to vector<4x8xf32>
    %31 = vector.shape_cast %30 : vector<4x8xf32> to vector<4x8x1xf32>
    %32 = arith.addf %29, %31 : vector<4x8x1xf32>
    %33 = vector.broadcast %25 : vector<4x8x1xf32> to vector<4x8x8xf32>
    %34 = arith.mulf %33, %17 : vector<4x8x8xf32>
    %35 = arith.truncf %28 : vector<4x8x8xf32> to vector<4x8x8xbf16>
    "tpu.trace_start"() <{level = 10 : i32, message = "hqk,hkd->hqd"}> : () -> ()
    %cst_20 = arith.constant dense<0.000000e+00> : vector<4x8x8xf32>
    %36 = tpu.matmul %35, %19, %cst_20 {dimension_numbers = #tpu.dot_dimension_numbers<[2], [1], [1], [2], [0, 0, 0, 1, 1, 2], [0], [0]>} : vector<4x8x8xbf16>, vector<4x8x8xbf16>, vector<4x8x8xf32> -> vector<4x8x8xf32>
    "tpu.trace_stop"() : () -> ()
    %37 = arith.addf %34, %36 : vector<4x8x8xf32>
    %38 = tpu.reciprocal %32 {approx = true} : vector<4x8x1xf32> -> vector<4x8x1xf32>
    %39 = vector.broadcast %38 : vector<4x8x1xf32> to vector<4x8x8xf32>
    %40 = arith.mulf %37, %39 : vector<4x8x8xf32>
    %41 = tpu.transpose %40, [1, 0, 2] : vector<4x8x8xf32> -> vector<8x4x8xf32>
    %42 = vector.shape_cast %41 : vector<8x4x8xf32> to vector<8x32xf32>
    %43 = arith.truncf %42 : vector<8x32xf32> to vector<8x32xbf16>
    %c0_21 = arith.constant 0 : index
    %c0_22 = arith.constant 0 : index
    %44 = vector.load %arg11[%c0_21, %c0_22] : memref<32x32xbf16, #tpu.memory_space<vmem>>, vector<32x32xbf16>
    %cst_23 = arith.constant dense<0.000000e+00> : vector<8x32xf32>
    %45 = tpu.matmul %43, %44, %cst_23 {dimension_numbers = #tpu.dot_dimension_numbers<[1], [0], [0], [1], [0, 0, 1, 1], [], []>} : vector<8x32xbf16>, vector<32x32xbf16>, vector<8x32xf32> -> vector<8x32xf32>
    %c0_24 = arith.constant 0 : index
    %c0_25 = arith.constant 0 : index
    %46 = vector.load %arg12[%c0_24, %c0_25] : memref<1x32xf32, #tpu.memory_space<vmem>>, vector<1x32xf32>
    %47 = vector.broadcast %46 : vector<1x32xf32> to vector<8x32xf32>
    %48 = arith.addf %45, %47 : vector<8x32xf32>
    %c0_26 = arith.constant 0 : index
    %c0_27 = arith.constant 0 : index
    %c0_28 = arith.constant 0 : index
    %49 = vector.load %arg13[%c0_26, %c0_27, %c0_28] : memref<1x8x32xf32, #tpu.memory_space<vmem>>, vector<1x8x32xf32>
    %50 = vector.shape_cast %49 : vector<1x8x32xf32> to vector<8x32xf32>
    %51 = vector.shape_cast %48 : vector<8x32xf32> to vector<1x8x32xf32>
    tpu.vector_store %arg13[%c0_26, %c0_27, %c0_28], %51 {strides = array<i32>} : memref<1x8x32xf32, #tpu.memory_space<vmem>>, vector<1x8x32xf32>,
    return
  }
  func.func @transform_0(%arg0: i32, %arg1: i32) -> (i32, i32, i32) {
    %c0_i32 = arith.constant 0 : i32
    %c0_i32_0 = arith.constant 0 : i32
    return %arg0, %arg1, %c0_i32 : i32, i32, i32
  }
  func.func @transform_1(%arg0: i32, %arg1: i32) -> (i32, i32, i32) {
    %c0_i32 = arith.constant 0 : i32
    %c0_i32_0 = arith.constant 0 : i32
    %c0_i32_1 = arith.constant 0 : i32
    return %arg0, %c0_i32, %c0_i32_0 : i32, i32, i32
  }
  func.func @transform_2(%arg0: i32, %arg1: i32) -> (i32, i32, i32) {
    %c0_i32 = arith.constant 0 : i32
    %c0_i32_0 = arith.constant 0 : i32
    %c0_i32_1 = arith.constant 0 : i32
    return %arg0, %c0_i32, %c0_i32_0 : i32, i32, i32
  }
  func.func @transform_3(%arg0: i32, %arg1: i32) -> (i32, i32) {
    %c0_i32 = arith.constant 0 : i32
    %c0_i32_0 = arith.constant 0 : i32
    %c0_i32_1 = arith.constant 0 : i32
    return %c0_i32, %c0_i32_0 : i32, i32
  }
  func.func @transform_4(%arg0: i32, %arg1: i32) -> (i32, i32) {
    %c0_i32 = arith.constant 0 : i32
    %c0_i32_0 = arith.constant 0 : i32
    %c0_i32_1 = arith.constant 0 : i32
    return %c0_i32, %c0_i32_0 : i32, i32
  }
  func.func @transform_5(%arg0: i32, %arg1: i32) -> (i32, i32) {
    %c0_i32 = arith.constant 0 : i32
    %c0_i32_0 = arith.constant 0 : i32
    %c0_i32_1 = arith.constant 0 : i32
    return %c0_i32, %c0_i32_0 : i32, i32
  }
  func.func @transform_6(%arg0: i32, %arg1: i32) -> (i32, i32) {
    %c0_i32 = arith.constant 0 : i32
    %c0_i32_0 = arith.constant 0 : i32
    %c0_i32_1 = arith.constant 0 : i32
    return %c0_i32, %c0_i32_0 : i32, i32
  }
  func.func @transform_7(%arg0: i32, %arg1: i32) -> (i32, i32) {
    %c0_i32 = arith.constant 0 : i32
    %c0_i32_0 = arith.constant 0 : i32
    %c0_i32_1 = arith.constant 0 : i32
    return %c0_i32, %c0_i32_0 : i32, i32
  }
  func.func @transform_8(%arg0: i32, %arg1: i32) -> (i32, i32) {
    %c0_i32 = arith.constant 0 : i32
    %c0_i32_0 = arith.constant 0 : i32
    %c0_i32_1 = arith.constant 0 : i32
    return %c0_i32, %c0_i32_0 : i32, i32
  }
  func.func @transform_9(%arg0: i32, %arg1: i32) -> (i32, i32) {
    %c0_i32 = arith.constant 0 : i32
    %c0_i32_0 = arith.constant 0 : i32
    %c0_i32_1 = arith.constant 0 : i32
    return %c0_i32, %c0_i32_0 : i32, i32
  }
  func.func @transform_10(%arg0: i32, %arg1: i32) -> (i32, i32) {
    %c0_i32 = arith.constant 0 : i32
    %c0_i32_0 = arith.constant 0 : i32
    %c0_i32_1 = arith.constant 0 : i32
    return %c0_i32, %c0_i32_0 : i32, i32
  }
  func.func @transform_11(%arg0: i32, %arg1: i32) -> (i32, i32, i32) {
    %c0_i32 = arith.constant 0 : i32
    %c0_i32_0 = arith.constant 0 : i32
    return %arg0, %arg1, %c0_i32 : i32, i32, i32
  }
}

</mosaic_0001>

<bundles_post_ra>
// kernel: tpu_custom_call.1
= control target key start
LH: loop header
LB: loop body
LE: loop exit
PB: predicated region body
PF: predicated region fallthrough
CT: control target
= control target key end

     0   :  { %s3221_s0 = inlined_call_operand.hbm [shape: bf16[2,8,32], index: 0, kind: input, shape index: {}]   ;;  %s3222_s1 = inlined_call_operand.hbm [shape: bf16[2,8,32], index: 1, kind: input, shape index: {}]   ;;  %s3223_s2 = inlined_call_operand.hbm [shape: bf16[2,8,32], index: 2, kind: input, shape index: {}]   ;;  %s3224_s3 = inlined_call_operand.hbm [shape: bf16[32,32], index: 3, kind: input, shape index: {}]   ;;  %s3225_s4 = inlined_call_operand.vmem [shape: f32[1,32], index: 4, kind: input, shape index: {}]   ;;  %s3226_s5 = inlined_call_operand.vmem [shape: bf16[32,32], index: 5, kind: input, shape index: {}]   ;;  %s3227_s6 = inlined_call_operand.vmem [shape: f32[1,32], index: 6, kind: input, shape index: {}]   ;;  %s3228_s7 = inlined_call_operand.hbm [shape: bf16[32,32], index: 7, kind: input, shape index: {}]   ;;  %s3229_s8 = inlined_call_operand.hbm [shape: f32[1,32], index: 8, kind: input, shape index: {}]   ;;  %s3230_s9 = inlined_call_operand.vmem [shape: bf16[32,32], index: 9, kind: input, shape index: {}]   ;;  %s3231_s10 = inlined_call_operand.vmem [shape: f32[1,32], index: 10, kind: input, shape index: {}]   ;;  %s3232_s11 = inlined_call_operand.hbm [shape: f32[2,8,32], index: 11, kind: output, shape index: {}]  }
   0x1   :  { %3258 = sst [smem:[#allocation29_spill]] %s3222_s1 }
   0x2   :  { %3259 = sst [smem:[#allocation30_spill]] %s3224_s3 }
   0x3   :  { %3260 = sst [smem:[#allocation31_spill]] %s3225_s4 }
   0x4   :  { %3261 = sst [smem:[#allocation32_spill]] %s3227_s6 }
   0x5   :  { %3262 = sst [smem:[#allocation33_spill]] %s3230_s9 }
   0x6   :  { %3263 = sst [smem:[#allocation34_spill]] %s3231_s10 }
   0x7   :  { %3264 = sst [smem:[#allocation35_spill]] %s3232_s11 }
   0x8   :  { %16 = vsyncpa [#allocation5], 0 }
   0x9   :  { %18 = vsyncpa [#allocation5 + $0x1], 0 }
   0xa   :  { %19 = vsyncpa [#allocation8], 0 }
   0xb   :  { %21 = vsyncpa [#allocation8 + $0x1], 0 }
   0xc   :  { %22 = vsyncpa [#allocation11], 0 }
   0xd   :  { %23 = vsyncpa [#allocation14], 0 }
   0xe   :  { %24 = vsyncpa [#allocation6], 0 }
   0xf   :  { %26 = vsyncpa [#allocation6 + $0x1], 0  ;;  %s2699_s17 = smov 0   ;;  %s2701_s18 = smov 0  }
  0x10   :  { %s2703_s19 = smov 0   ;;  %s2705_s20 = smov 0  }
  0x11   :  { %s2707_s21 = smov 0   ;;  %s2709_s22 = smov 0  }
  0x12 LB: > { %3265 = sst [smem:[#allocation21_spill]] %s2598_s17  ;;  %s2730_s23 = sadd.s32 4294967295, %s2618_s22   ;;  %s2618_s22 = sphi %s2709_s22, %s32_s22   ;;  %s2614_s21 = sphi %s2707_s21, %s3313_s21   ;;  %s2610_s20 = sphi %s2705_s20, %s3312_s20   ;;  %s2606_s19 = sphi %s2703_s19, %s3316_s19   ;;  %s2602_s18 = sphi %s2701_s18, %s3315_s18   ;;  %s2598_s17 = sphi %s2699_s17, %s3314_s17  }
  0x13   : > { %3266 = sst [smem:[#allocation22_spill]] %s2610_s20  ;;  %s2039_s24 = sadd.s32 4294967294, %s2618_s22  }
  0x14   : > { %3267 = sst [smem:[#allocation23_spill]] %s2614_s21  ;;  %p66_p0 = scmp.ne.s32.totalorder %s2602_s18, %s2598_s17 }
  0x15   : > { %3268 = sst [smem:[#allocation24_spill]] %s2618_s22  ;;  %p3235_p1 = scmp.eq.s32.totalorder %s2730_s23, 0 }
  0x16   : > { %p318_p3 = scmp.eq.s32.totalorder %s2039_s24, 1  ;;  %p2040_p5 = scmp.ge.s32.totalorder %s2618_s22, 1 }
  0x17   : > { %p2739_p4 = por %p3235_p1, %p66_p0  ;;  %p325_p7 = scmp.lt.s32.totalorder %s2618_s22, 3 }
  0x18   : > { %p2744_p6 = por %p318_p3, %p66_p0  ;;  %s2620_s28 = smov [#allocation10]  }
  0x19   : > { %s3269_s25 = scalar_select %p2739_p4, 1, 0 }
  0x1a   : > { %s3270_s26 = scalar_select %p2744_p6, 1, 0 }
  0x1b   : > { %p2749_p8 = pnand %p2040_p5, %p325_p7  ;;  %s337_s29 = sshll.u32 %s2620_s28, 4  ;;  %s338_s29 = int_to_ptr.vmem [resolvable:$true] %s337_s29 }
  0x1c   : > { %3271 = sst [smem:[#allocation25_spill]] %s3270_s26  ;;  %s44_s12 = sadd.s32 1, %s2614_s21 }
  0x1d   : > { %s3272_s27 = scalar_select %p2749_p8, 1, 0 }
  0x1e   : > { %p2223_p9 = pneg %p2749_p8  ;;  %s3274_s3 = sld [smem:[#allocation30_spill]] }
  0x20   : > { %p2758_p11 = pnand %p2223_p9, %p3235_p1 }
  0x22   : > { %s3273_s30 = scalar_select %p2758_p11, 1, 0 }
  0x23   : > { %p2771_p13 = pneg %p2758_p11 }
  0x24   : > { %s2350_s15 = scalar_lea.hbm %s3274_s3, 256 }
  0x25   : > { %p2351_p12 = scmp.ne.s32.totalorder %s3274_s3, %s2350_s15  ;;  %p2357_p5 = scmp.lt.u32.totalorder %s2350_s15, %s3274_s3 }
  0x26   : > { %s3275_s28 = scalar_select %p2771_p13, 1, 0 }
  0x27   : > { %p2353_p0 = pnand %p2771_p13, %p2351_p12 }
  0x29   : > { %p2354_p3 = pneg %p2353_p0 }
  0x2b   : > { %p2359_p7 = pnand %p2357_p5, %p2354_p3 }
  0x2d   : > { %2362 = shalt.err (!%p2359_p7)
}
  0x2e   : > { %s2363_s13 = scalar_lea.vmem %s338_s29, 256  ;;  %p2371_p2 = scmp.lt.s32.totalorder %s338_s29, %s338_s29 }
  0x2f   : > { %p2364_p9 = scmp.ne.s32.totalorder %s338_s29, %s2363_s13  ;;  %p2372_p6 = scmp.lt.s32.totalorder %s2363_s13, %s2363_s13 }
  0x31   : > { %p2366_p10 = pnand %p2364_p9, %p2771_p13  ;;  %p2373_p4 = por %p2372_p6, %p2371_p2 }
  0x33   : > { %p2367_p1 = pneg %p2366_p10 }
  0x35   : > { %p2374_p8 = pnand %p2373_p4, %p2367_p1 }
  0x37   : > { %2377 = shalt.err (!%p2374_p8)
}
  0x38   : > { %s3239_s14 = smov 64   ;;  %s3240_s17 = smov 4  }
  0x39   : > { %2226 = dma.hbm_to_vmem [thread:$0]  (!%p2758_p11), %s3274_s3, 256, %s338_s29, [#allocation11], %s3239_s14, %s3239_s14, %s3240_s17  }
  0x3a   : > { %p46_p1 = scmp.ge.s32.totalorder %s44_s12, 2  ;;  %s53_s16 = sadd.s32 1, %s2606_s19 }
  0x3b   : > { %p60_p2 = scmp.ne.s32.totalorder %s2606_s19, %s2602_s18  ;;  %p61_p4 = scmp.eq.s32.totalorder %s2618_s22, 0 }
  0x3c   : > { %s3318_s12 = smov (%p46_p1, %s44_s12), 0  ;;  %p3277_p8 = scmp.eq.s32.totalorder %s2730_s23, 1 }
  0x3d   : > { %3276 = sst [smem:[#allocation26_spill]] %s3318_s12  ;;  %p62_p6 = por %p61_p4, %p60_p2 }
  0x3e   : > { %p2798_p10 = por %p3277_p8, %p60_p2  ;;  %s48_s13 = ssub.s32 %s2614_s21, %s3318_s12 }
  0x3f   : > { %p2250_p12 = scmp.lt.s32.totalorder %s2618_s22, 2  ;;  %p51_p0 = scmp.eq.s32.totalorder %s48_s13, 0 }
  0x40   : > { %s3278_s24 = scalar_select %p2798_p10, 1, 0 }
  0x41   : > { %s3242_s11 = sand.u32 1, %s2606_s19   ;;  %s2811_s26 = sshll.u32 %s2614_s21, 6 }
  0x42   : > { %3279 = sst [smem:[#allocation27_spill]] %s3278_s24  ;;  %s2808_s29 = sshll.u32 %s3242_s11, 2 }
  0x43   : > { %s2814_s15 = scalar_select %p51_p0, %s2606_s19, %s53_s16  }
  0x44   : > { %p2816_p3 = pnand %p2250_p12, %p62_p6  ;;  %s409_s17 = sand.u32 1, %s2618_s22  }
  0x45   : > { %3280 = sst [smem:[#allocation28_spill]] %s2814_s15  ;;  %s3282_s1 = sld [smem:[#allocation29_spill]] }
  0x46   : > { %s3281_s14 = scalar_select %p2816_p3, 1, 0 }
  0x47   : > { %s413_s11 = scalar_lea.vmem [#allocation7], %s2808_s29  ;;  %s2623_s16 = smov [#allocation12]  }
  0x48   : > { %s420_s21 = sshll.u32 %s413_s11, 4  ;;  %s2830_s15 = sshll.u32 %s2623_s16, 4  ;;  %s2828_s21 = int_to_ptr.vmem [resolvable:$true] %s420_s21  ;;  %s360_s15 = int_to_ptr.vmem [resolvable:$true] %s2830_s15 }
  0x49   : > { %s2832_s24 = scalar_lea.sflag [#allocation8], %s409_s17  ;;  %p2838_p7 = pneg %p2816_p3 }
  0x4b   : > { %s2825_s13 = scalar_lea.hbm %s3282_s1, %s2811_s26  ;;  %s2383_s22 = scalar_lea.hbm %s3282_s1, 128 }
  0x4c   : > { %s2378_s10 = scalar_lea.hbm %s2825_s13, 64  ;;  %p2384_p2 = scmp.lt.u32.totalorder %s2825_s13, %s3282_s1 }
  0x4d   : > { %p2379_p5 = scmp.ne.s32.totalorder %s2825_s13, %s2378_s10  ;;  %p2385_p4 = scmp.lt.u32.totalorder %s2383_s22, %s2378_s10 }
  0x4e   : > { %s3283_s3 = scalar_select %p2838_p7, 1, 0 }
  0x4f   : > { %p2381_p9 = pnand %p2838_p7, %p2379_p5  ;;  %p2386_p6 = por %p2385_p4, %p2384_p2 }
  0x50   : > { %p2387_p8 = scmp.lt.u32.totalorder %s2378_s10, %s2825_s13 }
  0x51   : > { %p2382_p1 = pneg %p2381_p9 }
  0x52   : > { %p2388_p12 = por %p2387_p8, %p2386_p6 }
  0x54   : > { %p2389_p0 = pnand %p2388_p12, %p2382_p1 }
  0x56   : > { %2392 = shalt.err (!%p2389_p0)
}
  0x57   : > { %s2393_s17 = scalar_lea.vmem %s2828_s21, 64  ;;  %s2624_s12 = smov [#allocation7]  }
  0x58   : > { %p2394_p5 = scmp.ne.s32.totalorder %s2828_s21, %s2393_s17  ;;  %s2398_s11 = sshll.u32 %s2624_s12, 4  ;;  %s2399_s11 = int_to_ptr.vmem [resolvable:$false] %s2398_s11 }
  0x59   : > { %s2400_s20 = scalar_lea.vmem %s2399_s11, 128  ;;  %p2401_p11 = scmp.lt.s32.totalorder %s2828_s21, %s2399_s11 }
  0x5a   : > { %p2396_p9 = pnand %p2394_p5, %p2838_p7  ;;  %p2402_p13 = scmp.lt.s32.totalorder %s2400_s20, %s2393_s17 }
  0x5c   : > { %p2397_p10 = pneg %p2396_p9  ;;  %p2403_p2 = por %p2402_p13, %p2401_p11 }
  0x5e   : > { %p2404_p4 = pnand %p2403_p2, %p2397_p10 }
  0x60   : > { %2407 = shalt.err (!%p2404_p4)
}
  0x61   : > { %2239 = dma.hbm_to_vmem [thread:$0]  (!%p2816_p3), %s2825_s13, 64, %s2828_s21, %s2832_s24  }
  0x62   : > { %s2408_s16 = scalar_lea.hbm %s3228_s7, 256  ;;  %p3284_p11 = scmp.ne.s32.totalorder %s3275_s28, 0 }
  0x63   : > { %p2409_p1 = scmp.ne.s32.totalorder %s3228_s7, %s2408_s16  ;;  %p2415_p6 = scmp.lt.u32.totalorder %s2408_s16, %s3228_s7 }
  0x65   : > { %p2411_p13 = pnand %p2409_p1, %p3284_p11 }
  0x67   : > { %p2412_p10 = pneg %p2411_p13 }
  0x69   : > { %p2417_p8 = pnand %p2415_p6, %p2412_p10 }
  0x6b   : > { %2420 = shalt.err (!%p2417_p8)
}
  0x6c   : > { %s2421_s20 = scalar_lea.vmem %s360_s15, 256  ;;  %p2429_p9 = scmp.lt.s32.totalorder %s360_s15, %s360_s15 }
  0x6d   : > { %p2422_p12 = scmp.ne.s32.totalorder %s360_s15, %s2421_s20  ;;  %p2430_p2 = scmp.lt.s32.totalorder %s2421_s20, %s2421_s20 }
  0x6f   : > { %p2424_p0 = pnand %p2422_p12, %p3284_p11  ;;  %p2431_p4 = por %p2430_p2, %p2429_p9 }
  0x71   : > { %p2425_p5 = pneg %p2424_p0 }
  0x73   : > { %p2432_p3 = pnand %p2431_p4, %p2425_p5 }
  0x75   : > { %2435 = shalt.err (!%p2432_p3)
}
  0x76   : > { %p3285_p1 = scmp.ne.s32.totalorder %s3273_s30, 0  ;;  %s3286_s1 = smov 4  }
  0x77   : > { %s3287_s21 = smov 64   ;;  %s2625_s22 = smov [#allocation13]  }
  0x78   : > { %2229 = dma.hbm_to_vmem [thread:$0]  (!%p3285_p1), %s3228_s7, 256, %s360_s15, [#allocation11], %s3287_s21, %s3287_s21, %s3286_s1  }
  0x79   : > { %s373_s16 = sshll.u32 %s2625_s22, 4  ;;  %s2436_s11 = scalar_lea.hbm %s3229_s8, 16  ;;  %s374_s16 = int_to_ptr.vmem [resolvable:$true] %s373_s16 }
  0x7a   : > { %p2437_p3 = scmp.ne.s32.totalorder %s3229_s8, %s2436_s11  ;;  %p2443_p6 = scmp.lt.u32.totalorder %s2436_s11, %s3229_s8 }
  0x7c   : > { %p2439_p13 = pnand %p2437_p3, %p3284_p11 }
  0x7e   : > { %p2440_p10 = pneg %p2439_p13 }
  0x80   : > { %p2445_p8 = pnand %p2443_p6, %p2440_p10 }
  0x82   : > { %2448 = shalt.err (!%p2445_p8)
}
  0x83   : > { %s2449_s15 = scalar_lea.vmem %s374_s16, 16  ;;  %s2456_s1 = scalar_lea.vmem %s374_s16, 32 }
  0x84   : > { %p2450_p12 = scmp.ne.s32.totalorder %s374_s16, %s2449_s15  ;;  %p2457_p9 = scmp.lt.s32.totalorder %s374_s16, %s374_s16 }
  0x85   : > { %p2458_p2 = scmp.lt.s32.totalorder %s2456_s1, %s2449_s15 }
  0x86   : > { %p2452_p0 = pnand %p2450_p12, %p3284_p11 }
  0x87   : > { %p2459_p4 = por %p2458_p2, %p2457_p9 }
  0x88   : > { %p2453_p5 = pneg %p2452_p0 }
  0x8a   : > { %p2460_p7 = pnand %p2459_p4, %p2453_p5 }
  0x8c   : > { %2463 = shalt.err (!%p2460_p7)
}
  0x8d   : > { %2232 = dma.hbm_to_vmem [thread:$0]  (!%p3285_p1), %s3229_s8, 16, %s374_s16, [#allocation14]  }
  0x8e   : > { %s2906_s28 = scalar_lea.hbm %s3221_s0, %s2811_s26  ;;  %s394_s13 = scalar_lea.vmem [#allocation4], %s2808_s29 }
  0x8f   : > { %s402_s10 = sshll.u32 %s394_s13, 4  ;;  %s3288_s30 = sand.u32 1, %s2606_s19   ;;  %s403_s10 = int_to_ptr.vmem [resolvable:$true] %s402_s10 }
  0x90   : > { %s391_s22 = scalar_lea.sflag [#allocation5], %s3288_s30  ;;  %s2464_s12 = scalar_lea.hbm %s2906_s28, 64 }
  0x91   : > { %p2465_p7 = scmp.ne.s32.totalorder %s2906_s28, %s2464_s12  ;;  %p3289_p11 = scmp.ne.s32.totalorder %s3283_s3, 0 }
  0x92   : > { %s2469_s11 = scalar_lea.hbm %s3221_s0, 128  ;;  %p2470_p1 = scmp.lt.u32.totalorder %s2906_s28, %s3221_s0 }
  0x93   : > { %p2467_p3 = pnand %p2465_p7, %p3289_p11  ;;  %p2471_p10 = scmp.lt.u32.totalorder %s2469_s11, %s2464_s12 }
  0x94   : > { %p2473_p8 = scmp.lt.u32.totalorder %s2464_s12, %s2906_s28 }
  0x95   : > { %p2468_p13 = pneg %p2467_p3  ;;  %p2472_p6 = por %p2471_p10, %p2470_p1 }
  0x97   : > { %p2474_p12 = por %p2473_p8, %p2472_p6 }
  0x99   : > { %p2475_p0 = pnand %p2474_p12, %p2468_p13 }
  0x9b   : > { %2478 = shalt.err (!%p2475_p0)
}
  0x9c   : > { %s2479_s1 = scalar_lea.vmem %s403_s10, 64  ;;  %s2626_s9 = smov [#allocation4]  }
  0x9d   : > { %p2480_p5 = scmp.ne.s32.totalorder %s403_s10, %s2479_s1  ;;  %s2484_s21 = sshll.u32 %s2626_s9, 4  ;;  %s2485_s21 = int_to_ptr.vmem [resolvable:$false] %s2484_s21 }
  0x9e   : > { %s2486_s4 = scalar_lea.vmem %s2485_s21, 128  ;;  %p2487_p4 = scmp.lt.s32.totalorder %s403_s10, %s2485_s21 }
  0x9f   : > { %p2482_p9 = pnand %p2480_p5, %p3289_p11  ;;  %p2488_p7 = scmp.lt.s32.totalorder %s2486_s4, %s2479_s1 }
  0xa1   : > { %p2483_p2 = pneg %p2482_p9  ;;  %p2489_p3 = por %p2488_p7, %p2487_p4 }
  0xa3   : > { %p2490_p1 = pnand %p2489_p3, %p2483_p2 }
  0xa5   : > { %2493 = shalt.err (!%p2490_p1)
}
  0xa6   : > { %p3290_p10 = scmp.ne.s32.totalorder %s3281_s14, 0  ;;  %s2932_s30 = scalar_lea.hbm %s3223_s2, %s2811_s26 }
  0xa7   : > { %s431_s12 = scalar_lea.vmem [#allocation9], %s2808_s29  ;;  %s2494_s17 = scalar_lea.hbm %s2932_s30, 64 }
  0xa8   : > { %2236 = dma.hbm_to_vmem [thread:$0]  (!%p3290_p10), %s2906_s28, 64, %s403_s10, %s391_s22  }
  0xa9   : > { %s438_s16 = sshll.u32 %s431_s12, 4  ;;  %p2495_p13 = scmp.ne.s32.totalorder %s2932_s30, %s2494_s17  ;;  %s439_s16 = int_to_ptr.vmem [resolvable:$true] %s438_s16 }
  0xaa   : > { %s2499_s28 = scalar_lea.hbm %s3223_s2, 128  ;;  %p2500_p12 = scmp.lt.u32.totalorder %s2932_s30, %s3223_s2 }
  0xab   : > { %p2497_p6 = pnand %p2495_p13, %p3289_p11  ;;  %p2501_p0 = scmp.lt.u32.totalorder %s2499_s28, %s2494_s17 }
  0xac   : > { %p2503_p9 = scmp.lt.u32.totalorder %s2494_s17, %s2932_s30 }
  0xad   : > { %p2498_p8 = pneg %p2497_p6  ;;  %p2502_p5 = por %p2501_p0, %p2500_p12 }
  0xaf   : > { %p2504_p2 = por %p2503_p9, %p2502_p5 }
  0xb1   : > { %p2505_p4 = pnand %p2504_p2, %p2498_p8 }
  0xb3   : > { %2508 = shalt.err (!%p2505_p4)
}
  0xb4   : > { %s2509_s29 = scalar_lea.vmem %s439_s16, 64  ;;  %s2627_s26 = smov [#allocation9]  }
  0xb5   : > { %p2510_p7 = scmp.ne.s32.totalorder %s439_s16, %s2509_s29  ;;  %s2514_s15 = sshll.u32 %s2627_s26, 4  ;;  %s2515_s15 = int_to_ptr.vmem [resolvable:$false] %s2514_s15 }
  0xb6   : > { %s2516_s1 = scalar_lea.vmem %s2515_s15, 128  ;;  %p2517_p13 = scmp.lt.s32.totalorder %s439_s16, %s2515_s15 }
  0xb7   : > { %p2512_p3 = pnand %p2510_p7, %p3289_p11  ;;  %p2518_p6 = scmp.lt.s32.totalorder %s2516_s1, %s2509_s29 }
  0xb9   : > { %p2513_p1 = pneg %p2512_p3  ;;  %p2519_p10 = por %p2518_p6, %p2517_p13 }
  0xbb   : > { %p2520_p0 = pnand %p2519_p10, %p2513_p1 }
  0xbd   : > { %2523 = shalt.err (!%p2520_p0)
}
  0xbe   : > { %p3291_p12 = scmp.ne.s32.totalorder %s3281_s14, 0  ;;  %p3292_p8 = scmp.ne.s32.totalorder %s3272_s27, 0 }
  0xbf   : > { %s2956_s3 = sand.u32 (!%p3292_p8), 1, %s2602_s18   ;;  %p3293_p11 = scmp.ne.s32.totalorder (!%p3292_p8), %s3269_s25, 0 }
  0xc0   : > { %2242 = dma.hbm_to_vmem [thread:$0]  (!%p3291_p12), %s2932_s30, 64, %s439_s16, %s2832_s24  }
  0xc1   : > { %447 = sbr.rel (%p3292_p8) target bundleno = 1555 (0x613), region = 64  ;;  %s2959_s9 = sshll.u32 (!%p3292_p8), %s2956_s3, 2 }
  0xc2   : > { %s450_s21 = scalar_lea.sflag (!%p3292_p8), [#allocation5], %s2956_s3  ;;  %s453_s4 = scalar_lea.vmem (!%p3292_p8), [#allocation4], %s2959_s9 }
  0xc8   : > { %2577 = dma.done.wait (%p3293_p11), %s450_s21, 64  }
  0xc9   : > { %2579 = vsyncadd (%p3293_p11), %s450_s21, 4294967232  ;;  %s458_s27 = sand.u32 1, %s2730_s23   ;;  %s462_s24 = scalar_lea.vmem [#allocation7], %s2959_s9 }
  0xca   : > { %s459_s14 = scalar_lea.sflag [#allocation8], %s458_s27 }
  0xcb   : > { %2581 = dma.done.wait (%p3293_p11), %s459_s14, 128  }
  0xcc   : > { %2583 = vsyncadd (%p3293_p11), %s459_s14, 4294967168  ;;  %s471_s6 = scalar_lea.vmem [#allocation9], %s2959_s9  ;;  %p3294_p10 = scmp.eq.s32.totalorder %s2730_s23, 0 }
  0xce   : > { %2585 = dma.done.wait (%p3294_p10), [#allocation11], 512   ;;  %p3295_p5 = pmov %p3294_p10 }
  0xd0   : > { %2587 = vsyncadd (%p3295_p5), [#allocation11], 4294966784  ;;  %p3296_p9 = pmov %p3295_p5 }
  0xd1   : > { %p3297_p2 = pmov %p3295_p5 }
  0xd2   : > { %2589 = dma.done.wait (%p3296_p9), [#allocation14], 16  }
  0xd3   : > { %2591 = vsyncadd (%p3297_p2), [#allocation14], 4294967280  ;;  %v2628_v0 = vmov 0.0   ;;  %vm2629_vm0 = vmmov 0   ;;  %v2318_v1 = vld [vmem:[%s3226_s5] sm:$0xff]   ;;  %v2319_v2 = vld [vmem:[%s3226_s5 + $0x8] sm:$0xff]   ;;  %v687_v31 = vlaneseq }
  0xd4   : > { %2123 = vmatprep.subr.bf16.mxu0 %v2628_v0  ;;  %2127 = vmatprep.mubr.msk.bf16.mxu0 %vm2629_vm0, %v2628_v0  ;;  %v537_v3 = vld [vmem:[%s462_s24] sm:$0xf]  ;;  %vm561_vm1 = vcmask 261120   ;;  %v2320_v4 = vld [vmem:[#allocation10] sm:$0xff]   ;;  %v2321_v6 = vld [vmem:[#allocation10 + $0x8] sm:$0xff]   ;;  %s3298_s17 = sld [smem:[#allocation32_spill]] }
  0xd5   : > { %2131 = vmatprep.subr.bf16.mxu1 %v2628_v0  ;;  %2135 = vmatprep.mubr.msk.bf16.mxu1 %vm2629_vm0, %v2628_v0  ;;  %v2322_v5 = vld [vmem:[#allocation12] sm:$0xff]   ;;  %v981_v7 = vld [vmem:[%s453_s4] sm:$0xf]  ;;  %v2323_v8 = vld [vmem:[#allocation12 + $0x8] sm:$0xff]   ;;  %s2630_s11 = smov 104   ;;  %s2631_s20 = smov 120  }
  0xd6   : > { %2124 = vmatpush3.bf16.msra.mxu0 %v2318_v1  ;;  %2132 = vmatpush3.bf16.msra.mxu1 %v2322_v5  ;;  %v605_v9 = vld [vmem:[%s471_s6] sm:$0xf]  ;;  %s3299_s22 = sld [smem:[#allocation31_spill]]  ;;  %s2632_s29 = smov 112   ;;  %v2063_v23 = vld [vmem:[#allocation13] ss:$0 sm:$0xff] }
  0xd7   : > { %2125 = vmatprep.subr.bf16.mxu0 %v2628_v0  ;;  %2133 = vmatprep.subr.bf16.mxu1 %v2628_v0  ;;  %v2633_v29 = vmov 1983009808   ;;  %v2634_v32 = vmov 1934713408   ;;  %v688_v35 = vshrl.u32 %v687_v31, 7  ;;  %vm822_vm2 = vcmask 60416  }
  0xd8   : > { %v685_v30 = vunpack.c.l.s4 %v2633_v29  ;;  %v717_v33 = vunpack.c.l.s4 %v2634_v32  ;;  %vm1208_vm3 = vcmask 64512   ;;  %vm1456_vm4 = vcmask 1043456   ;;  %s3300_s1 = sld [smem:[#allocation33_spill]]  ;;  %s2635_s4 = smov 16  }
  0xd9   : > { %s2636_s27 = smov 8   ;;  %s3301_s14 = sld [smem:[#allocation22_spill]]  ;;  %vm1799_vm5 = vcmask 130048   ;;  %vm1801_vm6 = vcmask 195584  }
  0xda   : > { %2126 = vmatpush3.bf16.msra.mxu0 %v2319_v2  ;;  %2134 = vmatpush3.bf16.msra.mxu1 %v2323_v8  ;;  %v2059_v10 = vld [vmem:[%s3298_s17] ss:$0 sm:$0xff]  ;;  %v686_v34 = vunpack.c.0.s8 %v685_v30  ;;  %v718_v38 = vunpack.c.0.s8 %v717_v33  ;;  %s2637_s24 = smov 24   ;;  %s2058_s6 = sshll.u32 %s2956_s3, 3 }
  0xdb   : > { %2139 = vmatprep.subr.bf16.mxu0 %v2628_v0  ;;  %2147 = vmatprep.subr.bf16.mxu1 %v2628_v0  ;;  %s3302_s30 = sld [smem:[#allocation34_spill]]  ;;  %s3303_s23 = sld [smem:[#allocation27_spill]] }
  0xdc   : > { %v2071_v16 = vld [vmem:[%s3299_s22] ss:$0 sm:$0xff]  ;;  %v3029_v39 = vsub.s32 %v686_v34, %v688_v35  ;;  %v3031_v45 = vsub.s32 %v718_v38, %v688_v35  ;;  %s531_s16 = scalar_lea.vmem [#allocation15], %s2058_s6  ;;  %s3304_s28 = sld [smem:[#allocation35_spill]] }
  0xdd   : > { %2128 = vmatmul.mubr.msk.bf16.vlgmr.msra.gmra.mrb[0].mxu0 %vm561_vm1, %v537_v3  ;;  %2136 = vmatmul.mubr.msk.bf16.vlgmr.msra.gmra.mrb[0].mxu1 %vm561_vm1, %v605_v9  ;;  %s1886_s17 = sshll.u32 %s531_s16, 4  ;;  %s1872_s22 = scalar_lea.sflag [#allocation6], %s2956_s3  ;;  %s3173_s17 = int_to_ptr.vmem [resolvable:$true] %s1886_s17 }
  0xde   : > { %2140 = vmatpush3.bf16.msra.mxu0 %v2320_v4  ;;  %2143 = vmatprep.mubr.msk.bf16.mxu0 %vm2629_vm0, %v2628_v0  ;;  %s2638_s26 = smov [#allocation15]  }
  0xdf   : > { %2141 = vmatprep.subr.bf16.mxu0 %v2628_v0  ;;  %2149 = vmatprep.mubr.msk.bf16.mxu1 %vm2629_vm0, %v2628_v0  ;;  %s2092_s12 = sshll.u32 %s3301_s14, 7  ;;  %s2528_s15 = sshll.u32 %s2638_s26, 4  ;;  %s2529_s15 = int_to_ptr.vmem [resolvable:$false] %s2528_s15 }
  0xe0   : > { %s2530_s9 = scalar_lea.vmem %s2529_s15, 256  ;;  %p2531_p13 = scmp.lt.s32.totalorder %s3173_s17, %s2529_s15 }
  0xe1   : > { %p3305_p7 = scmp.ne.s32.totalorder %s3303_s23, 0 }
  0xe2   : > { %2142 = vmatpush3.bf16.msra.mxu0 %v2321_v6  ;;  %s3171_s10 = scalar_lea.hbm %s3304_s28, %s2092_s12 }
  0xe3   : > { %2153 = vmatprep.subr.bf16.mxu0 %v2628_v0 }
  0xe5   : > { %2144 = vmatmul.mubr.msk.bf16.vlgmr.msra.gmra.mrb[4].mxu0 %vm561_vm1, %v981_v7 }
  0xe6   : > { %2155 = vmatprep.mubr.msk.bf16.mxu0 %vm2629_vm0, %v2628_v0 }
 0x1b0   : > { %v599_v11 = vpop.f32.mrb[0].mxu0  ;;  %v666_v24 = vpop.f32.mrb[0].mxu1 }
 0x1b1   : > { %v600_v12 = vadd.f32 %v2059_v10, %v599_v11  ;;  %v2129_v13 = vpop.f32.mrb[1].mxu0  ;;  %v3024_v25 = vadd.f32 %v2063_v23, %v666_v24  ;;  %v2137_v26 = vpop.f32.mrb[1].mxu1 }
 0x1b2   : > { %v602_v14 = vpop.f32.mrb[2].mxu0  ;;  %v669_v27 = vpop.f32.mrb[2].mxu1 }
 0x1b3   : > { %679 = vrot.lane.b32.xlu1 %v600_v12, %s2630_s11  ;;  %673 = vrot.lane.b32.xlu0 %v600_v12, %s2631_s20  ;;  %v2130_v15 = vpop.f32.mrb[3].mxu0  ;;  %v2138_v28 = vpop.f32.mrb[3].mxu1 }
 0x1b7   : > { %676 = vrot.lane.b32.xlu0 %v600_v12, %s2632_s29 }
 0x1b8   : > { %v1043_v17 = vpop.f32.mrb[4].mxu0 }
 0x1b9   : > { %v1044_v18 = vadd.f32 %v2071_v16, %v1043_v17  ;;  %v2145_v19 = vpop.f32.mrb[5].mxu0 }
 0x1ba   : > { %v1046_v20 = vpop.f32.mrb[6].mxu0 }
 0x1bb   : > { %v3019_v21 = vmul.f32 0.35355338, %v1044_v18  ;;  %v2146_v22 = vpop.f32.mrb[7].mxu0 }
 0x1bd   : > { %1054 = vrot.lane.b32.xlu0 %v3019_v21, %s2632_s29  ;;  %1051 = vrot.lane.b32.xlu1 %v3019_v21, %s2631_s20 }
 0x1c1   : > { %1057 = vrot.lane.b32.xlu1 %v3019_v21, %s2630_s11  ;;  %828 = vrot.lane.b32.xlu0 %v3024_v25, %s2631_s20 }
 0x1c5   : > { %831 = vrot.lane.b32.xlu1 %v3024_v25, %s2632_s29  ;;  %834 = vrot.lane.b32.xlu0 %v3024_v25, %s2630_s11  ;;  %s2524_s29 = scalar_lea.vmem %s3173_s17, 128 }
 0x1c6   : > { %p2525_p4 = scmp.ne.s32.totalorder %s3173_s17, %s2524_s29  ;;  %p2532_p6 = scmp.lt.s32.totalorder %s2530_s9, %s2524_s29 }
 0x1c8   : > { %p2526_p3 = pnand %p2525_p4, %p3305_p7  ;;  %p2533_p0 = por %p2532_p6, %p2531_p13 }
 0x1ca   : > { %p2527_p1 = pneg %p2526_p3 }
 0x1cc   : > { %p2534_p12 = pnand %p2533_p0, %p2527_p1 }
 0x225   : > { %v680_v36 = vpop.permute.xlu1 %679  ;;  %v674_v37 = vpop.permute.xlu0 %673 }
 0x226   : > { %v698_v40 = vcombine.low %v674_v37, %v680_v36  ;;  %v699_v41 = vcombine.high %v674_v37, %v680_v36 }
 0x228   : > { %v706_v46 = vrot.slane %v698_v40, %v3029_v39  ;;  %v713_v47 = vrot.slane %v699_v41, %v3029_v39 }
 0x229   : > { %v677_v42 = vpop.permute.xlu0 %676 }
 0x22a   : > { %v682_v43 = vcombine.low %v600_v12, %v677_v42  ;;  %v683_v44 = vcombine.high %v600_v12, %v677_v42 }
 0x22c   : > { %v690_v48 = vrot.slane %v682_v43, %v3029_v39  ;;  %v697_v49 = vrot.slane %v683_v44, %v3029_v39 }
 0x22e   : > { %v714_v50 = vcombine.low %v690_v48, %v706_v46  ;;  %v715_v51 = vcombine.high %v690_v48, %v706_v46  ;;  %v730_v52 = vcombine.low %v697_v49, %v713_v47  ;;  %v731_v53 = vcombine.high %v697_v49, %v713_v47 }
 0x22f   : > { %v1052_v54 = vpop.permute.xlu1 %1051  ;;  %v1055_v59 = vpop.permute.xlu0 %1054 }
 0x230   : > { %v722_v55 = vrot.slane %v714_v50, %v3031_v45  ;;  %v729_v56 = vrot.slane %v715_v51, %v3031_v45  ;;  %v738_v57 = vrot.slane %v730_v52, %v3031_v45  ;;  %v745_v58 = vrot.slane %v731_v53, %v3031_v45 }
 0x231   : > { %v1060_v1 = vcombine.low %v3019_v21, %v1055_v59  ;;  %v1061_v2 = vcombine.high %v3019_v21, %v1055_v59 }
 0x232   : > { %v750_v60 = vcombine.low %v722_v55, %v729_v56  ;;  %v2067_v61 = vcombine.high %v722_v55, %v729_v56  ;;  %v766_v62 = vcombine.low %v738_v57, %v745_v58  ;;  %v2068_v63 = vcombine.high %v738_v57, %v745_v58 }
 0x233   : > { %v1058_v3 = vpop.permute.xlu1 %1057  ;;  %v1068_v14 = vrot.slane %v1060_v1, %v3029_v39  ;;  %v1075_v15 = vrot.slane %v1061_v2, %v3029_v39 }
 0x234   : > { %v757_v4 = vrot.slane %v750_v60, %v3029_v39  ;;  %v765_v5 = vrot.slane %v2067_v61, %v3029_v39  ;;  %v773_v6 = vrot.slane %v766_v62, %v3029_v39  ;;  %v781_v7 = vrot.slane %v2068_v63, %v3029_v39 }
 0x235   : > { %v1076_v8 = vcombine.low %v1052_v54, %v1058_v3  ;;  %v1077_v9 = vcombine.high %v1052_v54, %v1058_v3 }
 0x236   : > { %v782_v10 = vcombine.low %v757_v4, %v765_v5  ;;  %v783_v11 = vcombine.high %v757_v4, %v765_v5  ;;  %v798_v12 = vcombine.low %v773_v6, %v781_v7  ;;  %v799_v13 = vcombine.high %v773_v6, %v781_v7 }
 0x237   : > { %v1084_v16 = vrot.slane %v1076_v8, %v3029_v39  ;;  %v1091_v17 = vrot.slane %v1077_v9, %v3029_v39 }
 0x238   : > { %v790_v18 = vrot.slane %v782_v10, %v3031_v45  ;;  %v797_v19 = vrot.slane %v783_v11, %v3031_v45  ;;  %v806_v20 = vrot.slane %v798_v12, %v3031_v45  ;;  %v813_v21 = vrot.slane %v799_v13, %v3031_v45  ;;  %v829_v10 = vpop.permute.xlu0 %828  ;;  %v832_v11 = vpop.permute.xlu1 %831 }
 0x239   : > { %v1092_v22 = vcombine.low %v1068_v14, %v1084_v16  ;;  %v1093_v23 = vcombine.high %v1068_v14, %v1084_v16  ;;  %v1108_v24 = vcombine.low %v1075_v15, %v1091_v17  ;;  %v1109_v26 = vcombine.high %v1075_v15, %v1091_v17 }
 0x23a   : > { %v814_v27 = vcombine.low %v790_v18, %v806_v20  ;;  %v815_v28 = vcombine.high %v790_v18, %v806_v20  ;;  %v816_v29 = vcombine.low %v797_v19, %v813_v21  ;;  %v817_v30 = vcombine.high %v797_v19, %v813_v21 }
 0x23b   : > { %v1100_v31 = vrot.slane %v1092_v22, %v3031_v45  ;;  %v1107_v32 = vrot.slane %v1093_v23, %v3031_v45  ;;  %v1116_v33 = vrot.slane %v1108_v24, %v3031_v45  ;;  %v1123_v34 = vrot.slane %v1109_v26, %v3031_v45 }
 0x23c   : > { %v818_v35 = vpack.c.bf16 %v814_v27, %v814_v27  ;;  %v819_v36 = vpack.c.bf16 %v815_v28, %v815_v28  ;;  %v820_v37 = vpack.c.bf16 %v816_v29, %v816_v29  ;;  %v821_v38 = vpack.c.bf16 %v817_v30, %v817_v30  ;;  %v835_v14 = vpop.permute.xlu0 %834 }
 0x23d   : > { %v1128_v40 = vcombine.low %v1100_v31, %v1107_v32  ;;  %v2075_v41 = vcombine.high %v1100_v31, %v1107_v32  ;;  %v1144_v42 = vcombine.low %v1116_v33, %v1123_v34  ;;  %v2076_v43 = vcombine.high %v1116_v33, %v1123_v34 }
 0x23e   : > { %823 = vst.msk [vmem:[#allocation2] sm:$0xf] %vm822_vm2, %v818_v35  ;;  %824 = vst.msk [vmem:[#allocation2 + $0x4] sm:$0xf] %vm822_vm2, %v819_v36  ;;  %v837_v12 = vcombine.low %v3024_v25, %v832_v11  ;;  %v838_v13 = vcombine.high %v3024_v25, %v832_v11  ;;  %v853_v15 = vcombine.low %v829_v10, %v835_v14 }
 0x23f   : > { %825 = vst.msk [vmem:[#allocation2 + $0x8] sm:$0xf] %vm822_vm2, %v820_v37  ;;  %826 = vst.msk [vmem:[#allocation2 + $0xc] sm:$0xf] %vm822_vm2, %v821_v38  ;;  %v1135_v44 = vrot.slane %v1128_v40, %v3029_v39  ;;  %v1143_v46 = vrot.slane %v2075_v41, %v3029_v39  ;;  %v1151_v47 = vrot.slane %v1144_v42, %v3029_v39 }
 0x240   : > { %v1159_v48 = vrot.slane %v2076_v43, %v3029_v39  ;;  %v854_v16 = vcombine.high %v829_v10, %v835_v14  ;;  %v845_v17 = vrot.slane %v837_v12, %v3029_v39  ;;  %v852_v18 = vrot.slane %v838_v13, %v3029_v39 }
 0x241   : > { %v1160_v49 = vcombine.low %v1135_v44, %v1143_v46  ;;  %v1161_v57 = vcombine.high %v1135_v44, %v1143_v46  ;;  %v861_v19 = vrot.slane %v853_v15, %v3029_v39 }
 0x242   : > { %v1176_v50 = vcombine.low %v1151_v47, %v1159_v48  ;;  %v1177_v58 = vcombine.high %v1151_v47, %v1159_v48  ;;  %v868_v20 = vrot.slane %v854_v16, %v3029_v39 }
 0x243   : > { %v1168_v51 = vrot.slane %v1160_v49, %v3031_v45  ;;  %v1175_v2 = vrot.slane %v1161_v57, %v3031_v45  ;;  %v869_v21 = vcombine.low %v845_v17, %v861_v19  ;;  %v870_v22 = vcombine.high %v845_v17, %v861_v19 }
 0x244   : > { %v1184_v52 = vrot.slane %v1176_v50, %v3031_v45  ;;  %v1191_v3 = vrot.slane %v1177_v58, %v3031_v45  ;;  %v885_v23 = vcombine.low %v852_v18, %v868_v20  ;;  %v886_v24 = vcombine.high %v852_v18, %v868_v20 }
 0x245   : > { %v1200_v53 = vld [vmem:[#allocation2] sm:$0xf]  ;;  %v1201_v54 = vld [vmem:[#allocation2 + $0x4] sm:$0xf]  ;;  %v877_v26 = vrot.slane %v869_v21, %v3031_v45  ;;  %v884_v27 = vrot.slane %v870_v22, %v3031_v45 }
 0x246   : > { %v1213_v55 = vsel %vm1208_vm3, %v1200_v53, 0  ;;  %v1259_v56 = vsel %vm1208_vm3, %v1201_v54, 0  ;;  %v1192_v59 = vcombine.low %v1168_v51, %v1184_v52  ;;  %v1193_v60 = vcombine.high %v1168_v51, %v1184_v52  ;;  %v1202_v61 = vld [vmem:[#allocation2 + $0x8] sm:$0xf]  ;;  %v1203_v62 = vld [vmem:[#allocation2 + $0xc] sm:$0xf] }
 0x247   : > { %2148 = vmatpush3.bf16.xpose.msra.mxu1 %v1213_v55  ;;  %2154 = vmatpush3.bf16.xpose.msra.mxu0 %v1259_v56  ;;  %v1305_v4 = vsel %vm1208_vm3, %v1202_v61, 0  ;;  %v1351_v5 = vsel %vm1208_vm3, %v1203_v62, 0  ;;  %v1194_v6 = vcombine.low %v1175_v2, %v1191_v3  ;;  %v1195_v7 = vcombine.high %v1175_v2, %v1191_v3 }
 0x248   : > { %2159 = vmatprep.subr.bf16.mxu1 %v2628_v0  ;;  %2165 = vmatprep.subr.bf16.mxu0 %v2628_v0  ;;  %v1196_v63 = vpack.c.bf16 %v1192_v59, %v1192_v59  ;;  %v1197_v1 = vpack.c.bf16 %v1193_v60, %v1193_v60  ;;  %v893_v25 = vrot.slane %v885_v23, %v3031_v45 }
 0x249   : > { %v1198_v8 = vpack.c.bf16 %v1194_v6, %v1194_v6  ;;  %v1199_v9 = vpack.c.bf16 %v1195_v7, %v1195_v7  ;;  %v900_v28 = vrot.slane %v886_v24, %v3031_v45  ;;  %v905_v29 = vcombine.low %v877_v26, %v884_v27 }
 0x24a   : > { %v2069_v30 = vcombine.high %v877_v26, %v884_v27 }
 0x24b   : > { %v921_v31 = vcombine.low %v893_v25, %v900_v28  ;;  %v2070_v32 = vcombine.high %v893_v25, %v900_v28  ;;  %v912_v33 = vrot.slane %v905_v29, %v3029_v39 }
 0x24c   : > { %v920_v34 = vrot.slane %v2069_v30, %v3029_v39 }
 0x24d   : > { %v928_v35 = vrot.slane %v921_v31, %v3029_v39  ;;  %v936_v36 = vrot.slane %v2070_v32, %v3029_v39 }
 0x24e   : > { %2150 = vmatmul.mubr.msk.bf16.vlgmr.msra.gmra.mrb[4].mxu1 %vm1208_vm3, %v1196_v63  ;;  %2156 = vmatmul.mubr.msk.bf16.vlgmr.msra.gmra.mrb[8].mxu0 %vm1208_vm3, %v1197_v1  ;;  %v937_v37 = vcombine.low %v912_v33, %v920_v34  ;;  %v938_v38 = vcombine.high %v912_v33, %v920_v34 }
 0x24f   : > { %2160 = vmatpush3.bf16.xpose.msra.mxu1 %v1305_v4  ;;  %2166 = vmatpush3.bf16.xpose.msra.mxu0 %v1351_v5  ;;  %v953_v40 = vcombine.low %v928_v35, %v936_v36  ;;  %v954_v41 = vcombine.high %v928_v35, %v936_v36 }
 0x250   : > { %2161 = vmatprep.mubr.msk.bf16.mxu1 %vm2629_vm0, %v2628_v0  ;;  %2167 = vmatprep.mubr.msk.bf16.mxu0 %vm2629_vm0, %v2628_v0  ;;  %v945_v42 = vrot.slane %v937_v37, %v3031_v45  ;;  %v952_v43 = vrot.slane %v938_v38, %v3031_v45 }
 0x251   : > { %2171 = vmatprep.subr.bf16.mxu1 %v2628_v0  ;;  %2177 = vmatprep.subr.bf16.mxu0 %v2628_v0  ;;  %v961_v44 = vrot.slane %v953_v40, %v3031_v45  ;;  %v968_v46 = vrot.slane %v954_v41, %v3031_v45 }
 0x253   : > { %v969_v47 = vcombine.low %v945_v42, %v961_v44  ;;  %v970_v48 = vcombine.high %v945_v42, %v961_v44  ;;  %v971_v49 = vcombine.low %v952_v43, %v968_v46  ;;  %v972_v50 = vcombine.high %v952_v43, %v968_v46 }
 0x255   : > { %v973_v51 = vpack.c.bf16 %v969_v47, %v969_v47  ;;  %v974_v52 = vpack.c.bf16 %v970_v48, %v970_v48  ;;  %v975_v53 = vpack.c.bf16 %v971_v49, %v971_v49  ;;  %v976_v54 = vpack.c.bf16 %v972_v50, %v972_v50 }
 0x256   : > { %2162 = vmatmul.mubr.msk.bf16.vlgmr.msra.gmra.mrb[8].mxu1 %vm1208_vm3, %v1198_v8  ;;  %2168 = vmatmul.mubr.msk.bf16.vlgmr.msra.gmra.mrb[12].mxu0 %vm1208_vm3, %v1199_v9 }
 0x257   : > { %2173 = vmatprep.mubr.msk.bf16.mxu1 %vm2629_vm0, %v2628_v0  ;;  %2179 = vmatprep.mubr.msk.bf16.mxu0 %vm2629_vm0, %v2628_v0  ;;  %977 = vst.msk [vmem:[#allocation3] sm:$0xf] %vm822_vm2, %v973_v51  ;;  %978 = vst.msk [vmem:[#allocation3 + $0x4] sm:$0xf] %vm822_vm2, %v974_v52 }
 0x258   : > { %979 = vst.msk [vmem:[#allocation3 + $0x8] sm:$0xf] %vm822_vm2, %v975_v53  ;;  %980 = vst.msk [vmem:[#allocation3 + $0xc] sm:$0xf] %vm822_vm2, %v976_v54 }
 0x25e   : > { %v1204_v55 = vld [vmem:[#allocation3] sm:$0xf]  ;;  %v1205_v56 = vld [vmem:[#allocation3 + $0x4] sm:$0xf] }
 0x25f   : > { %v1458_v57 = vsel %vm1456_vm4, %v1204_v55, 0  ;;  %v1504_v58 = vsel %vm1456_vm4, %v1205_v56, 0  ;;  %v1206_v29 = vld [vmem:[#allocation3 + $0x8] sm:$0xf]  ;;  %v1207_v33 = vld [vmem:[#allocation3 + $0xc] sm:$0xf] }
 0x260   : > { %2172 = vmatpush3.bf16.msra.mxu1 %v1458_v57  ;;  %2178 = vmatpush3.bf16.msra.mxu0 %v1504_v58  ;;  %v1550_v36 = vsel %vm1456_vm4, %v1206_v29, 0  ;;  %v1596_v37 = vsel %vm1456_vm4, %v1207_v33, 0 }
 0x261   : > { %2183 = vmatprep.subr.bf16.mxu1 %v2628_v0  ;;  %2189 = vmatprep.subr.bf16.mxu0 %v2628_v0 }
 0x321   : > { %v1249_v59 = vpop.f32.mrb[4].mxu1  ;;  %v1295_v60 = vpop.f32.mrb[8].mxu0 }
 0x322   : > { %v2151_v61 = vpop.f32.mrb[5].mxu1  ;;  %v2157_v62 = vpop.f32.mrb[9].mxu0  ;;  %v1393_v63 = vsel %vm1208_vm3, %v1249_v59, -inf  ;;  %v1396_v1 = vsel %vm1208_vm3, %v1295_v60, -inf }
 0x323   : > { %1394 = vmax.xlane.f32.xlu1 %v1393_v63  ;;  %v1252_v2 = vpop.f32.mrb[6].mxu1  ;;  %1397 = vmax.xlane.f32.xlu0 %v1396_v1  ;;  %v1298_v3 = vpop.f32.mrb[10].mxu0 }
 0x324   : > { %v2152_v4 = vpop.f32.mrb[7].mxu1  ;;  %v2158_v5 = vpop.f32.mrb[11].mxu0 }
 0x329   : > { %v1341_v6 = vpop.f32.mrb[8].mxu1  ;;  %v1387_v7 = vpop.f32.mrb[12].mxu0 }
 0x32a   : > { %v2163_v8 = vpop.f32.mrb[9].mxu1  ;;  %v2169_v9 = vpop.f32.mrb[13].mxu0  ;;  %v1399_v10 = vsel %vm1208_vm3, %v1341_v6, -inf  ;;  %v1402_v11 = vsel %vm1208_vm3, %v1387_v7, -inf }
 0x32b   : > { %v1344_v12 = vpop.f32.mrb[10].mxu1  ;;  %1400 = vmax.xlane.f32.xlu0 %v1399_v10  ;;  %1403 = vmax.xlane.f32.xlu1 %v1402_v11  ;;  %v1390_v13 = vpop.f32.mrb[14].mxu0 }
 0x32c   : > { %v2164_v14 = vpop.f32.mrb[11].mxu1  ;;  %v2170_v15 = vpop.f32.mrb[15].mxu0 }
 0x3b0   : > { %v1395_v16 = vpop.xlane.xlu1 %1394  ;;  %v1398_v17 = vpop.xlane.xlu0 %1397 }
 0x3b1   : > { %v1417_v18 = vsub.f32 %v1249_v59, %v1395_v16  ;;  %v1418_v19 = vsub.f32 %v1295_v60, %v1398_v17  ;;  %v1405_v46 = vsub.f32 -inf, %v1395_v16  ;;  %v1406_v47 = vsub.f32 -inf, %v1398_v17 }
 0x3b3   : > { %v1421_v20 = vmul.f32 1.442695, %v1417_v18  ;;  %v1423_v21 = vmul.f32 1.442695, %v1418_v19  ;;  %v1409_v48 = vmul.f32 1.442695, %v1405_v46 }
 0x3b4   : > { %v1411_v49 = vmul.f32 1.442695, %v1406_v47 }
 0x3b5   : > { %2326 = vpow2.f32 %v1421_v20 }
 0x3b6   : > { %2328 = vpow2.f32 %v1423_v21 }
 0x3b8   : > { %v1401_v22 = vpop.xlane.xlu0 %1400  ;;  %v1404_v23 = vpop.xlane.xlu1 %1403 }
 0x3b9   : > { %v1419_v24 = vsub.f32 %v1341_v6, %v1401_v22  ;;  %v1420_v26 = vsub.f32 %v1387_v7, %v1404_v23  ;;  %v1407_v50 = vsub.f32 -inf, %v1401_v22  ;;  %v1408_v51 = vsub.f32 -inf, %v1404_v23 }
 0x3bb   : > { %v1425_v27 = vmul.f32 1.442695, %v1419_v24  ;;  %v1427_v25 = vmul.f32 1.442695, %v1420_v26  ;;  %v1413_v52 = vmul.f32 1.442695, %v1407_v50 }
 0x3bc   : > { %v1415_v53 = vmul.f32 1.442695, %v1408_v51 }
 0x3bd   : > { %2330 = vpow2.f32 %v1425_v27 }
 0x3be   : > { %2332 = vpow2.f32 %v1427_v25 }
 0x3bf   : > { %v2327_v28 = vpop.eup %2326  ;;  %2334 = vpow2.f32 %v1409_v48 }
 0x3c0   : > { %v1433_v30 = vsel %vm1208_vm3, %v2327_v28, 0.0  ;;  %v1449_v31 = vpack.c.bf16 %v2327_v28, %v2327_v28  ;;  %v2329_v32 = vpop.eup %2328  ;;  %2336 = vpow2.f32 %v1411_v49  ;;  %v2324_v49 = vld [vmem:[%s3300_s1] sm:$0xff]  }
 0x3c1   : > { %1434 = vadd.xlane.f32.xlu0 %v1433_v30  ;;  %v1436_v34 = vsel %vm1208_vm3, %v2329_v32, 0.0  ;;  %v1450_v35 = vpack.c.bf16 %v2329_v32, %v2329_v32  ;;  %2338 = vpow2.f32 %v1413_v52 }
 0x3c2   : > { %2174 = vmatmul.mubr.msk.bf16.vlgmr.msra.gmra.mrb[12].mxu1 %vm1208_vm3, %v1449_v31  ;;  %1437 = vadd.xlane.f32.xlu1 %v1436_v34  ;;  %2340 = vpow2.f32 %v1415_v53 }
 0x3c3   : > { %2184 = vmatpush3.bf16.msra.mxu1 %v1550_v36  ;;  %2180 = vmatmul.mubr.msk.bf16.vlgmr.msra.gmra.mrb[16].mxu0 %vm1208_vm3, %v1450_v35 }
 0x3c4   : > { %2185 = vmatprep.mubr.msk.bf16.mxu1 %vm2629_vm0, %v2628_v0  ;;  %2190 = vmatpush3.bf16.msra.mxu0 %v1596_v37 }
 0x3c5   : > { %2191 = vmatprep.mubr.msk.bf16.mxu0 %vm2629_vm0, %v2628_v0  ;;  %2195 = vmatprep.subr.bf16.mxu1 %v2628_v0 }
 0x3c7   : > { %v2331_v38 = vpop.eup %2330 }
 0x3c8   : > { %v1439_v40 = vsel %vm1208_vm3, %v2331_v38, 0.0  ;;  %v1451_v41 = vpack.c.bf16 %v2331_v38, %v2331_v38  ;;  %v2333_v42 = vpop.eup %2332 }
 0x3c9   : > { %1440 = vadd.xlane.f32.xlu0 %v1439_v40  ;;  %v1442_v43 = vsel %vm1208_vm3, %v2333_v42, 0.0  ;;  %v1452_v44 = vpack.c.bf16 %v2333_v42, %v2333_v42  ;;  %v2335_v54 = vpop.eup %2334 }
 0x3ca   : > { %2186 = vmatmul.mubr.msk.bf16.vlgmr.msra.gmra.mrb[16].mxu1 %vm1208_vm3, %v1451_v41  ;;  %1443 = vadd.xlane.f32.xlu1 %v1442_v43  ;;  %v2337_v55 = vpop.eup %2336  ;;  %v1429_v57 = vmul.f32 0.0, %v2335_v54 }
 0x3cb   : > { %2199 = vmatprep.mubr.msk.bf16.mxu1 %vm2629_vm0, %v2628_v0  ;;  %2192 = vmatmul.mubr.msk.bf16.vlgmr.msra.gmra.mrb[20].mxu0 %vm1208_vm3, %v1452_v44  ;;  %v1430_v60 = vmul.f32 0.0, %v2337_v55  ;;  %v2339_v62 = vpop.eup %2338 }
 0x3cc   : > { %v2341_v63 = vpop.eup %2340  ;;  %v1431_v2 = vmul.f32 0.0, %v2339_v62  ;;  %2196 = vmatpush3.bf16.msra.mxu1 %v2324_v49 }
 0x3cd   : > { %v1432_v5 = vmul.f32 0.0, %v2341_v63  ;;  %2197 = vmatprep.subr.bf16.mxu1 %v2628_v0 }
 0x44e   : > { %v1435_v56 = vpop.xlane.xlu0 %1434 }
 0x44f   : > { %v1438_v58 = vpop.xlane.xlu1 %1437  ;;  %v1445_v59 = vadd.f32 %v1435_v56, %v1429_v57 }
 0x450   : > { %v1446_v61 = vadd.f32 %v1438_v58, %v1430_v60  ;;  %v2325_v58 = vld [vmem:[%s3300_s1 + $0x8] sm:$0xff]  }
 0x451   : > { %2342 = vrcp.f32 %v1445_v59  ;;  %2198 = vmatpush3.bf16.msra.mxu1 %v2325_v58 }
 0x452   : > { %2344 = vrcp.f32 %v1446_v61 }
 0x456   : > { %v1441_v1 = vpop.xlane.xlu0 %1440 }
 0x457   : > { %v1444_v3 = vpop.xlane.xlu1 %1443  ;;  %v1447_v4 = vadd.f32 %v1441_v1, %v1431_v2 }
 0x458   : > { %v1448_v6 = vadd.f32 %v1444_v3, %v1432_v5 }
 0x459   : > { %2346 = vrcp.f32 %v1447_v4 }
 0x45a   : > { %2348 = vrcp.f32 %v1448_v6 }
 0x45b   : > { %v2343_v10 = vpop.eup %2342 }
 0x45c   : > { %v2345_v17 = vpop.eup %2344 }
 0x463   : > { %v2347_v24 = vpop.eup %2346 }
 0x464   : > { %v2349_v31 = vpop.eup %2348 }
 0x495   : > { %v1494_v7 = vpop.f32.mrb[12].mxu1 }
 0x496   : > { %v1638_v8 = vadd.f32 %v1494_v7, %v1429_v57  ;;  %v2175_v9 = vpop.f32.mrb[13].mxu1  ;;  %v1540_v11 = vpop.f32.mrb[16].mxu0 }
 0x497   : > { %v1497_v12 = vpop.f32.mrb[14].mxu1  ;;  %v1639_v14 = vadd.f32 %v1540_v11, %v1430_v60  ;;  %v2181_v15 = vpop.f32.mrb[17].mxu0 }
 0x498   : > { %v1646_v13 = vmul.f32 %v2343_v10, %v1638_v8  ;;  %v2176_v16 = vpop.f32.mrb[15].mxu1  ;;  %v1543_v18 = vpop.f32.mrb[18].mxu0 }
 0x499   : > { %v1647_v19 = vmul.f32 %v2345_v17, %v1639_v14  ;;  %v2182_v20 = vpop.f32.mrb[19].mxu0  ;;  %v2087_v16 = vld [vmem:[%s3302_s30] ss:$0 sm:$0xff] }
 0x49d   : > { %v1586_v21 = vpop.f32.mrb[16].mxu1 }
 0x49e   : > { %v1640_v22 = vadd.f32 %v1586_v21, %v1431_v2  ;;  %v2187_v23 = vpop.f32.mrb[17].mxu1  ;;  %v1632_v26 = vpop.f32.mrb[20].mxu0 }
 0x49f   : > { %v1589_v27 = vpop.f32.mrb[18].mxu1  ;;  %v1641_v28 = vadd.f32 %v1632_v26, %v1432_v5  ;;  %v2193_v29 = vpop.f32.mrb[21].mxu0 }
 0x4a0   : > { %v1648_v25 = vmul.f32 %v2347_v24, %v1640_v22  ;;  %v2188_v30 = vpop.f32.mrb[19].mxu1  ;;  %v1635_v32 = vpop.f32.mrb[22].mxu0 }
 0x4a1   : > { %v1649_v35 = vmul.f32 %v2349_v31, %v1641_v28  ;;  %v2194_v36 = vpop.f32.mrb[23].mxu0 }
 0x4a2   : > { %v1650_v33 = vcombine.low %v1646_v13, %v1648_v25  ;;  %v1651_v34 = vcombine.high %v1646_v13, %v1648_v25 }
 0x4a3   : > { %v1666_v40 = vcombine.low %v1647_v19, %v1649_v35  ;;  %v1667_v41 = vcombine.high %v1647_v19, %v1649_v35 }
 0x4a4   : > { %v1658_v37 = vrot.slane %v1650_v33, %v3029_v39  ;;  %v1665_v38 = vrot.slane %v1651_v34, %v3029_v39 }
 0x4a5   : > { %v1674_v42 = vrot.slane %v1666_v40, %v3029_v39  ;;  %v1681_v43 = vrot.slane %v1667_v41, %v3029_v39 }
 0x4a7   : > { %v1682_v44 = vcombine.low %v1658_v37, %v1674_v42  ;;  %v1683_v46 = vcombine.high %v1658_v37, %v1674_v42  ;;  %v1698_v47 = vcombine.low %v1665_v38, %v1681_v43  ;;  %v1699_v48 = vcombine.high %v1665_v38, %v1681_v43 }
 0x4a9   : > { %v1690_v50 = vrot.slane %v1682_v44, %v3031_v45  ;;  %v1697_v51 = vrot.slane %v1683_v46, %v3031_v45  ;;  %v1706_v52 = vrot.slane %v1698_v47, %v3031_v45  ;;  %v1713_v53 = vrot.slane %v1699_v48, %v3031_v45 }
 0x4ab   : > { %v1718_v54 = vcombine.low %v1690_v50, %v1697_v51  ;;  %v2085_v55 = vcombine.high %v1690_v50, %v1697_v51  ;;  %v1734_v56 = vcombine.low %v1706_v52, %v1713_v53  ;;  %v2086_v57 = vcombine.high %v1706_v52, %v1713_v53 }
 0x4ad   : > { %v1725_v59 = vrot.slane %v1718_v54, %v3029_v39  ;;  %v1733_v60 = vrot.slane %v2085_v55, %v3029_v39  ;;  %v1741_v61 = vrot.slane %v1734_v56, %v3029_v39  ;;  %v1749_v62 = vrot.slane %v2086_v57, %v3029_v39 }
 0x4af   : > { %v1751_v63 = vcombine.high %v1725_v59, %v1733_v60  ;;  %v1767_v1 = vcombine.high %v1741_v61, %v1749_v62  ;;  %v1750_v0 = vcombine.low %v1725_v59, %v1733_v60  ;;  %v1766_v2 = vcombine.low %v1741_v61, %v1749_v62 }
 0x4b1   : > { %v1765_v3 = vrot.slane %v1751_v63, %v3031_v45  ;;  %v1781_v4 = vrot.slane %v1767_v1, %v3031_v45  ;;  %v1758_v5 = vrot.slane %v1750_v0, %v3031_v45  ;;  %v1774_v6 = vrot.slane %v1766_v2, %v3031_v45 }
 0x4b3   : > { %v1784_v7 = vcombine.low %v1765_v3, %v1781_v4  ;;  %v1783_v8 = vcombine.high %v1758_v5, %v1774_v6  ;;  %v1785_v9 = vcombine.high %v1765_v3, %v1781_v4  ;;  %v1782_v10 = vcombine.low %v1758_v5, %v1774_v6 }
 0x4b5   : > { %1791 = vrot.lane.b32.xlu1 %v1784_v7, %s2635_s4  ;;  %1787 = vrot.lane.b32.xlu0 %v1783_v8, %s2636_s27 }
 0x4b9   : > { %1795 = vrot.lane.b32.xlu1 %v1785_v9, %s2637_s24 }
 0x527   : > { %v1792_v39 = vpop.permute.xlu1 %1791  ;;  %v1788_v11 = vpop.permute.xlu0 %1787 }
 0x528   : > { %v1798_v12 = vsel %vm1208_vm3, %v1782_v10, %v1788_v11 }
 0x529   : > { %v1800_v45 = vsel %vm1799_vm5, %v1798_v12, %v1792_v39 }
 0x52b   : > { %v1796_v13 = vpop.permute.xlu1 %1795 }
 0x52c   : > { %v1802_v14 = vsel %vm1801_vm6, %v1800_v45, %v1796_v13 }
 0x52d   : > { %v1803_v15 = vpack.c.bf16 %v1802_v14, %v1802_v14 }
 0x52f   : > { %2200 = vmatmul.mubr.msk.bf16.vlgmr.msra.gmra.mrb[20].mxu1 %vm561_vm1, %v1803_v15 }
 0x602   : > { %v1864_v17 = vpop.f32.mrb[20].mxu1 }
 0x603   : > { %v1865_v18 = vadd.f32 %v2087_v16, %v1864_v17  ;;  %v2201_v19 = vpop.f32.mrb[21].mxu1 }
 0x604   : > { %v1867_v20 = vpop.f32.mrb[22].mxu1 }
 0x605   : > { %v2202_v21 = vpop.f32.mrb[23].mxu1  ;;  %1870 = vst.msk [vmem:[%s531_s16] sm:$0xff] %vm561_vm1, %v1865_v18 }
 0x606   : > { %2537 = shalt.err (!%p2534_p12)
}
 0x607   : > { %s2538_s3 = scalar_lea.hbm %s3171_s10, 128  ;;  %s2542_s27 = scalar_lea.hbm %s3304_s28, 256 }
 0x608   : > { %p2539_p8 = scmp.ne.s32.totalorder %s3171_s10, %s2538_s3  ;;  %p2543_p5 = scmp.lt.u32.totalorder %s3171_s10, %s3304_s28 }
 0x609   : > { %p2544_p9 = scmp.lt.u32.totalorder %s2542_s27, %s2538_s3  ;;  %p2546_p4 = scmp.lt.u32.totalorder %s2538_s3, %s3171_s10 }
 0x60a   : > { %p2540_p11 = pnand %p2539_p8, %p3305_p7 }
 0x60b   : > { %p2545_p2 = por %p2544_p9, %p2543_p5 }
 0x60c   : > { %p2541_p10 = pneg %p2540_p11 }
 0x60d   : > { %p2547_p3 = por %p2546_p4, %p2545_p2 }
 0x60f   : > { %p2548_p1 = pnand %p2547_p3, %p2541_p10 }
 0x611   : > { %2551 = shalt.err (!%p2548_p1)
}
 0x612   : > { %2221 = dma.vmem_to_hbm [thread:$0]  (%p3305_p7), %s3173_s17, 128, %s3171_s10, %s1872_s22  }
 0x613 PF: > { %s3306_s6 = sld [smem:[#allocation21_spill]]  ;;  %s3307_s25 = sld [smem:[#allocation25_spill]] }
 0x614   : > { %s3308_s13 = sld [smem:[#allocation24_spill]] }
 0x619   : > { %s1898_s30 = sand.u32 1, %s3306_s6   ;;  %p3309_p13 = scmp.ne.s32.totalorder %s3307_s25, 0 }
 0x61a   : > { %p3310_p6 = scmp.ge.s32.totalorder %s3308_s13, 2  ;;  %s1899_s12 = scalar_lea.sflag [#allocation6], %s1898_s30 }
 0x61c   : > { %p2244_p0 = pnand %p3310_p6, %p3309_p13 }
 0x61e   : > { %2593 = dma.done.wait (!%p2244_p0), %s1899_s12, 128  }
 0x61f   : > { %2595 = vsyncadd (!%p2244_p0), %s1899_s12, 4294967168  ;;  %s32_s22 = sadd.s32 1, %s3308_s13   ;;  %s3311_s23 = sld [smem:[#allocation28_spill]] }
 0x620   : > { %p29_p12 = scmp.ge.s32.totalorder %s32_s22, 4   ;;  %s3312_s20 = sld [smem:[#allocation23_spill]] }
 0x621   : > { %s3313_s21 = sld [smem:[#allocation26_spill]]  ;;  %s3314_s17 = smov %s2602_s18 }
 0x622   : > { %s3315_s18 = smov %s2606_s19  ;;  %31 = sbr.rel (!%p29_p12) target bundleno = 18 (0x12), region = 149 }
 0x625   : > { %s3316_s19 = smov %s3311_s23 }
 0x629   :  { %1904 = vsyncpa [#allocation5], 1 }
 0x62a   :  { %1906 = vsyncpa [#allocation5 + $0x1], 1 }
 0x62b   :  { %1907 = vsyncpa [#allocation8], 1 }
 0x62c   :  { %1909 = vsyncpa [#allocation8 + $0x1], 1 }
 0x62d   :  { %1910 = vsyncpa [#allocation11], 1 }
 0x62e   :  { %1911 = vsyncpa [#allocation14], 1 }
 0x62f   :  { %1912 = vsyncpa [#allocation6], 1 }
 0x630   :  { %1914 = vsyncpa [#allocation6 + $0x1], 1 }

</bundles_post_ra>
